<compile_context>
chip_gen: v7x
topology: tpu7x:2x2x1
jax: 0.10.0
libtpu: 0.0.40
codegen_flags: <defaults>
</compile_context>

<pallas_src>
import functools

import jax
import jax.numpy as jnp
import numpy as np
from jax.experimental import pallas as pl
from jax.experimental.pallas import tpu as pltpu


# ----------------------------- Pallas kernel ------------------------------- #

def _minlstm_kernel(x_ref, preh_ref, w_ref, b_ref, out_ref, h_carry, f_s, v_s):
    # x_ref:    (S_T, B_T, D)       gate-matmul input tile (seq-major)
    # preh_ref: (1, B_T, D_T)       previous hidden state slice (f32)
    # w_ref:    (3, D, D_T)         [Wf^T, Wi^T, Wh^T] column slab
    # b_ref:    (3, 1, D_T)         [bf, bi, bh] slab (f32)
    # out_ref:  (S_T, B_T, D_T)
    # h_carry:  (B_T, D_T) f32      hidden state carried across S-tiles
    # f_s, v_s: (S_T, B_T, D_T) f32 scratch: forget gates / input terms
    s_t, b_t, d_in = x_ref.shape
    d_t = out_ref.shape[-1]

    def sigmoid(v):
        # stable logistic: 1 exp + 1 approx reciprocal (EUP) + VPU select
        e = jnp.exp(-jnp.abs(v))
        r = pl.reciprocal(1.0 + e, approx=True)
        return jnp.where(v >= 0.0, r, e * r)

    def g(v):
        # exp(log_g(v)) of the reference: v + 0.5 for v >= 0, sigmoid(v) for v < 0
        return jnp.where(v >= 0.0, v + 0.5, sigmoid(v))

    # ---- gate matmuls: one MXU pass per gate over the whole (S_T*B_T, D) tile ----
    x2 = x_ref[...].reshape(s_t * b_t, d_in)
    kf = (jnp.dot(x2, w_ref[0], preferred_element_type=jnp.float32)
          + b_ref[0]).reshape(s_t, b_t, d_t)
    ki = (jnp.dot(x2, w_ref[1], preferred_element_type=jnp.float32)
          + b_ref[1]).reshape(s_t, b_t, d_t)
    kh = (jnp.dot(x2, w_ref[2], preferred_element_type=jnp.float32)
          + b_ref[2]).reshape(s_t, b_t, d_t)

    # Gate values, fully vectorized over the tile (off the serial path).
    f_s[...] = sigmoid(kf)             # forget gate  = exp(log_f)
    v_s[...] = sigmoid(ki) * g(kh)     # input term   = exp(log_i + log_tilde_h)

    # ---- (re)initialize the hidden-state carry at the first S-tile ----
    @pl.when(pl.program_id(2) == 0)
    def _():
        h_carry[...] = g(preh_ref[0].astype(jnp.float32))

    # ---- sequential scan: h_t = f_t * h_{t-1} + v_t (1 mul + 1 add / step) ----
    def body(t, h):
        h = f_s[t] * h + v_s[t]
        out_ref[t] = h.astype(out_ref.dtype)
        return h

    h_last = jax.lax.fori_loop(0, s_t, body, h_carry[...], unroll=min(s_t, 16))
    h_carry[...] = h_last              # carry h into the next S-tile


# ----------------------------- Tiling helpers ------------------------------- #

def _pick_s_tile(s):
    # <= 64 timesteps per tile, rounded to a multiple of 8 (keeps the matmul
    # row count S_T*B_T a multiple of 128/256 for the MXU).
    n = pl.cdiv(s, 64)
    return min(pl.cdiv(pl.cdiv(s, n), 8) * 8, 64)


def _pick_d_tile(d):
    if d % 128 != 0:
        return d  # odd feature dims: full-dim block (always layout-legal)
    for cand in (512, 384, 256, 128):
        if d % cand == 0:
            return min(cand, d)
    return d


def _vmem_limit_bytes():
    try:
        phys = int(pltpu.get_tpu_info().vmem_capacity_bytes)
    except Exception:
        phys = 64 * 1024 * 1024  # conservative (v7x physical) if query unavailable
    # ~25% headroom for compiler scratch / pipeline buffers; cap well under
    # v5e/v6e's 128 MiB physical.
    return min(100 * 1024 * 1024, (phys // 4) * 3)


# ------------------------------- Wrapper ------------------------------------ #

@functools.partial(jax.jit, static_argnames=("matmul_dtype",))
def minlstm_forward(x, pre_h, w_f, b_f, w_i, b_i, w_h, b_h,
                    matmul_dtype=jnp.bfloat16):
    """x: (B, S, D), pre_h: (B, 1, D) or None, w_*: (D, D) [nn.Linear layout], b_*: (D,).

    matmul_dtype: operand dtype of the gate matmuls (bf16 default; the MXU
    accumulates in f32 and all gate/scan math stays f32).  Pass jnp.float32
    for a full-precision run.
    """
    B, S, D = x.shape
    out_dtype = x.dtype
    if pre_h is None:
        pre_h = jnp.zeros((B, 1, D), dtype=x.dtype)

    mm_dtype = jnp.dtype(matmul_dtype) if matmul_dtype is not None else jnp.dtype(out_dtype)
    b_tile = 16 if mm_dtype.itemsize < 4 else 8   # packed sublanes for bf16, 8 for f32
    s_tile = _pick_s_tile(S)
    d_tile = _pick_d_tile(D)
    b_pad = pl.cdiv(B, b_tile) * b_tile
    s_pad = pl.cdiv(S, s_tile) * s_tile

    # nn.Linear computes x @ W.T + b; per-gate slabs (3, D, D) avoid unaligned
    # lane slices of a concatenated (.., 3D) matmul result.
    w3 = jnp.stack([w_f.T, w_i.T, w_h.T], axis=0).astype(mm_dtype)            # (3, D, D)
    b3 = jnp.stack([b_f, b_i, b_h], axis=0)[:, None, :].astype(jnp.float32)   # (3, 1, D)

    # (B, S, D) -> (S, B, D): D stays on lanes, b_tile rows fill the sublane
    # axis of every per-timestep tile of the serial scan.
    # TODO(synk): this transpose (and the inverse one on the output) is a full
    # HBM pass; folding it into the kernel needs an in-VMEM (b,s)->(s,b)
    # sublane relayout per tile, which Mosaic does not lower reliably for all
    # shapes, so it stays in the wrapper for robustness.
    xt = jnp.transpose(x, (1, 0, 2)).astype(mm_dtype)
    pht = jnp.transpose(pre_h, (1, 0, 2)).astype(jnp.float32)
    if (s_pad, b_pad) != (S, B):
        xt = jnp.pad(xt, ((0, s_pad - S), (0, b_pad - B), (0, 0)))
        pht = jnp.pad(pht, ((0, 0), (0, b_pad - B), (0, 0)))

    grid = (b_pad // b_tile, D // d_tile, s_pad // s_tile)

    grid_spec = pltpu.PrefetchScalarGridSpec(
        num_scalar_prefetch=0,
        grid=grid,
        in_specs=[
            pl.BlockSpec((s_tile, b_tile, D), lambda b, d, s: (s, b, 0)),      # x (full D)
            pl.BlockSpec((1, b_tile, d_tile), lambda b, d, s: (0, b, d)),      # pre_h slice
            pl.BlockSpec((3, D, d_tile), lambda b, d, s: (0, 0, d)),           # weights (resident per d)
            pl.BlockSpec((3, 1, d_tile), lambda b, d, s: (0, 0, d)),           # biases  (resident per d)
        ],
        out_specs=pl.BlockSpec((s_tile, b_tile, d_tile), lambda b, d, s: (s, b, d)),
        scratch_shapes=[
            pltpu.VMEM((b_tile, d_tile), jnp.float32),           # h carry across S-tiles
            pltpu.VMEM((s_tile, b_tile, d_tile), jnp.float32),   # forget gates
            pltpu.VMEM((s_tile, b_tile, d_tile), jnp.float32),   # input terms
        ],
    )

    out_t = pl.pallas_call(
        _minlstm_kernel,
        out_shape=jax.ShapeDtypeStruct((s_pad, b_pad, D), out_dtype),
        grid_spec=grid_spec,
        compiler_params=pltpu.CompilerParams(
            # batch & feature tiles shard across cores; sequence axis is the
            # carried (sequential) axis and must stay innermost.
            dimension_semantics=("parallel", "parallel", "arbitrary"),
            vmem_limit_bytes=_vmem_limit_bytes(),
        ),
    )(xt, pht, w3, b3)

    # (S_pad, B_pad, D) -> (B, S, D)
    return jnp.transpose(out_t, (1, 0, 2))[:B, :S]


# --------------------------- Pure-JAX reference ------------------------------ #
# Mirrors the PyTorch module exactly (log-space parallel scan).

def _ref_forward(x, pre_h, w_f, b_f, w_i, b_i, w_h, b_h):
    def softplus(v):
        return jnp.logaddexp(v, 0.0)

    def log_g(v):
        return jnp.where(v >= 0, jnp.log(jax.nn.relu(v) + 0.5), -softplus(-v))

    kf = x @ w_f.T + b_f
    ki = x @ w_i.T + b_i
    kh = x @ w_h.T + b_h
    log_f = -softplus(-kf)
    log_i = -softplus(-ki)
    log_th = log_g(kh)
    log_pre_h = log_g(pre_h)
    log_values = jnp.concatenate([log_pre_h, log_i + log_th], axis=1)   # (B, S+1, D)
    a_star = jnp.pad(jnp.cumsum(log_f, axis=1), ((0, 0), (1, 0), (0, 0)))
    lcse = jax.lax.cumlogsumexp(log_values - a_star, axis=1)
    log_h = a_star + lcse
    return jnp.exp(log_h)[:, 1:]


# --------------------------------- Main -------------------------------------- #

if __name__ == "__main__":
    def make_inputs(key, B, S, D):
        kx, kph, kwf, kbf, kwi, kbi, kwh, kbh = jax.random.split(key, 8)
        x = jax.random.normal(kx, (B, S, D), dtype=jnp.float32)
        pre_h = 0.5 * jax.random.normal(kph, (B, 1, D), dtype=jnp.float32)
        # nn.Linear(dim, dim) init: U(-1/sqrt(dim), 1/sqrt(dim)) for W and b.
        bound = 1.0 / np.sqrt(D)
        uni = lambda k, shape: jax.random.uniform(k, shape, jnp.float32, -bound, bound)
        return (x, pre_h, uni(kwf, (D, D)), uni(kbf, (D,)),
                uni(kwi, (D, D)), uni(kbi, (D,)), uni(kwh, (D, D)), uni(kbh, (D,)))

    # Small shape implied by the module: batch=2, seq=8, hidden=32.
    args = make_inputs(jax.random.PRNGKey(0), 2, 8, 32)
    ref = _ref_forward(*args)

    out_bf16 = jax.block_until_ready(minlstm_forward(*args))             # default bf16 MXU
    np.testing.assert_allclose(np.asarray(out_bf16), np.asarray(ref), rtol=3e-2, atol=3e-2)

    out_f32 = jax.block_until_ready(minlstm_forward(*args, matmul_dtype=jnp.float32))
    np.testing.assert_allclose(np.asarray(out_f32), np.asarray(ref), rtol=1e-2, atol=1e-2)

    # Larger shape exercising the S-tile hidden-state carry (two 40-step
    # S-tiles) and the D-parallel axis (two 128-lane feature tiles).
    args2 = make_inputs(jax.random.PRNGKey(1), 4, 80, 256)
    ref2 = _ref_forward(*args2)
    out2 = jax.block_until_ready(minlstm_forward(*args2, matmul_dtype=jnp.float32))
    np.testing.assert_allclose(np.asarray(out2), np.asarray(ref2), rtol=1e-2, atol=1e-2)

    print("KERNEL_OK")
</pallas_src>

<mosaic_0001>
module attributes {stable_mosaic.version = 11 : i64} {
  func.func @_minlstm_kernel(%arg0: i32, %arg1: i32, %arg2: i32, %arg3: memref<8x16x32xbf16, #tpu.memory_space<vmem>>, %arg4: memref<1x16x32xf32, #tpu.memory_space<vmem>>, %arg5: memref<3x32x32xbf16, #tpu.memory_space<vmem>>, %arg6: memref<3x1x32xf32, #tpu.memory_space<vmem>>, %arg7: memref<8x16x32xf32, #tpu.memory_space<vmem>>, %arg8: memref<16x32xf32, #tpu.memory_space<vmem>>, %arg9: memref<8x16x32xf32, #tpu.memory_space<vmem>>, %arg10: memref<8x16x32xf32, #tpu.memory_space<vmem>>) attributes {dimension_semantics = [#tpu.dimension_semantics<parallel>, #tpu.dimension_semantics<parallel>, #tpu.dimension_semantics<arbitrary>], iteration_bounds = array<i64: 1, 1, 1>, scalar_prefetch = 0 : i64, scratch_operands = 3 : i64, tpu.core_type = #tpu.core_type<tc>, window_params = [{transform_indices = @transform_0, window_bounds = array<i64: 8, 16, 32>}, {transform_indices = @transform_1, window_bounds = array<i64: 1, 16, 32>}, {transform_indices = @transform_2, window_bounds = array<i64: 3, 32, 32>}, {transform_indices = @transform_3, window_bounds = array<i64: 3, 1, 32>}, {transform_indices = @transform_4, window_bounds = array<i64: 8, 16, 32>}]} {
    %c0 = arith.constant 0 : index
    %c0_0 = arith.constant 0 : index
    %c0_1 = arith.constant 0 : index
    %0 = vector.load %arg3[%c0, %c0_0, %c0_1] : memref<8x16x32xbf16, #tpu.memory_space<vmem>>, vector<8x16x32xbf16>
    %1 = vector.shape_cast %0 : vector<8x16x32xbf16> to vector<128x32xbf16>
    %c0_2 = arith.constant 0 : index
    %c0_3 = arith.constant 0 : index
    %c0_4 = arith.constant 0 : index
    %2 = vector.load %arg5[%c0_2, %c0_3, %c0_4] : memref<3x32x32xbf16, #tpu.memory_space<vmem>>, vector<1x32x32xbf16>
    %3 = vector.shape_cast %2 : vector<1x32x32xbf16> to vector<32x32xbf16>
    %cst = arith.constant dense<0.000000e+00> : vector<128x32xf32>
    %4 = tpu.matmul %1, %3, %cst {dimension_numbers = #tpu.dot_dimension_numbers<[1], [0], [0], [1], [0, 0, 1, 1], [], []>} : vector<128x32xbf16>, vector<32x32xbf16>, vector<128x32xf32> -> vector<128x32xf32>
    %c0_5 = arith.constant 0 : index
    %c0_6 = arith.constant 0 : index
    %c0_7 = arith.constant 0 : index
    %5 = vector.load %arg6[%c0_5, %c0_6, %c0_7] : memref<3x1x32xf32, #tpu.memory_space<vmem>>, vector<1x1x32xf32>
    %6 = vector.shape_cast %5 : vector<1x1x32xf32> to vector<1x32xf32>
    %7 = vector.broadcast %6 : vector<1x32xf32> to vector<128x32xf32>
    %8 = arith.addf %4, %7 : vector<128x32xf32>
    %9 = vector.shape_cast %8 : vector<128x32xf32> to vector<8x16x32xf32>
    %c1 = arith.constant 1 : index
    %c0_8 = arith.constant 0 : index
    %c0_9 = arith.constant 0 : index
    %10 = vector.load %arg5[%c1, %c0_8, %c0_9] : memref<3x32x32xbf16, #tpu.memory_space<vmem>>, vector<1x32x32xbf16>
    %11 = vector.shape_cast %10 : vector<1x32x32xbf16> to vector<32x32xbf16>
    %cst_10 = arith.constant dense<0.000000e+00> : vector<128x32xf32>
    %12 = tpu.matmul %1, %11, %cst_10 {dimension_numbers = #tpu.dot_dimension_numbers<[1], [0], [0], [1], [0, 0, 1, 1], [], []>} : vector<128x32xbf16>, vector<32x32xbf16>, vector<128x32xf32> -> vector<128x32xf32>
    %c1_11 = arith.constant 1 : index
    %c0_12 = arith.constant 0 : index
    %c0_13 = arith.constant 0 : index
    %13 = vector.load %arg6[%c1_11, %c0_12, %c0_13] : memref<3x1x32xf32, #tpu.memory_space<vmem>>, vector<1x1x32xf32>
    %14 = vector.shape_cast %13 : vector<1x1x32xf32> to vector<1x32xf32>
    %15 = vector.broadcast %14 : vector<1x32xf32> to vector<128x32xf32>
    %16 = arith.addf %12, %15 : vector<128x32xf32>
    %17 = vector.shape_cast %16 : vector<128x32xf32> to vector<8x16x32xf32>
    %c2 = arith.constant 2 : index
    %c0_14 = arith.constant 0 : index
    %c0_15 = arith.constant 0 : index
    %18 = vector.load %arg5[%c2, %c0_14, %c0_15] : memref<3x32x32xbf16, #tpu.memory_space<vmem>>, vector<1x32x32xbf16>
    %19 = vector.shape_cast %18 : vector<1x32x32xbf16> to vector<32x32xbf16>
    %cst_16 = arith.constant dense<0.000000e+00> : vector<128x32xf32>
    %20 = tpu.matmul %1, %19, %cst_16 {dimension_numbers = #tpu.dot_dimension_numbers<[1], [0], [0], [1], [0, 0, 1, 1], [], []>} : vector<128x32xbf16>, vector<32x32xbf16>, vector<128x32xf32> -> vector<128x32xf32>
    %c2_17 = arith.constant 2 : index
    %c0_18 = arith.constant 0 : index
    %c0_19 = arith.constant 0 : index
    %21 = vector.load %arg6[%c2_17, %c0_18, %c0_19] : memref<3x1x32xf32, #tpu.memory_space<vmem>>, vector<1x1x32xf32>
    %22 = vector.shape_cast %21 : vector<1x1x32xf32> to vector<1x32xf32>
    %23 = vector.broadcast %22 : vector<1x32xf32> to vector<128x32xf32>
    %24 = arith.addf %20, %23 : vector<128x32xf32>
    %25 = vector.shape_cast %24 : vector<128x32xf32> to vector<8x16x32xf32>
    %26 = math.absf %9 : vector<8x16x32xf32>
    %cst_20 = arith.constant 0.000000e+00 : f32
    %27 = vector.broadcast %cst_20 : f32 to vector<8x16x32xf32>
    %28 = arith.subf %27, %26 : vector<8x16x32xf32>
    %29 = math.exp %28 : vector<8x16x32xf32>
    %cst_21 = arith.constant 1.000000e+00 : f32
    %30 = vector.broadcast %cst_21 : f32 to vector<8x16x32xf32>
    %31 = arith.addf %30, %29 : vector<8x16x32xf32>
    %32 = tpu.reciprocal %31 {approx = true} : vector<8x16x32xf32> -> vector<8x16x32xf32>
    %cst_22 = arith.constant 0.000000e+00 : f32
    %33 = vector.broadcast %cst_22 : f32 to vector<8x16x32xf32>
    %34 = arith.cmpf oge, %9, %33 : vector<8x16x32xf32>
    %35 = arith.mulf %29, %32 : vector<8x16x32xf32>
    %36 = arith.select %34, %32, %35 : vector<8x16x32xi1>, vector<8x16x32xf32>
    %c0_23 = arith.constant 0 : index
    %c0_24 = arith.constant 0 : index
    %c0_25 = arith.constant 0 : index
    %37 = vector.load %arg9[%c0_23, %c0_24, %c0_25] : memref<8x16x32xf32, #tpu.memory_space<vmem>>, vector<8x16x32xf32>
    tpu.vector_store %arg9[%c0_23, %c0_24, %c0_25], %36 {strides = array<i32>} : memref<8x16x32xf32, #tpu.memory_space<vmem>>, vector<8x16x32xf32>,
    %38 = math.absf %17 : vector<8x16x32xf32>
    %cst_26 = arith.constant 0.000000e+00 : f32
    %39 = vector.broadcast %cst_26 : f32 to vector<8x16x32xf32>
    %40 = arith.subf %39, %38 : vector<8x16x32xf32>
    %41 = math.exp %40 : vector<8x16x32xf32>
    %cst_27 = arith.constant 1.000000e+00 : f32
    %42 = vector.broadcast %cst_27 : f32 to vector<8x16x32xf32>
    %43 = arith.addf %42, %41 : vector<8x16x32xf32>
    %44 = tpu.reciprocal %43 {approx = true} : vector<8x16x32xf32> -> vector<8x16x32xf32>
    %cst_28 = arith.constant 0.000000e+00 : f32
    %45 = vector.broadcast %cst_28 : f32 to vector<8x16x32xf32>
    %46 = arith.cmpf oge, %17, %45 : vector<8x16x32xf32>
    %47 = arith.mulf %41, %44 : vector<8x16x32xf32>
    %48 = arith.select %46, %44, %47 : vector<8x16x32xi1>, vector<8x16x32xf32>
    %cst_29 = arith.constant 0.000000e+00 : f32
    %49 = vector.broadcast %cst_29 : f32 to vector<8x16x32xf32>
    %50 = arith.cmpf oge, %25, %49 : vector<8x16x32xf32>
    %cst_30 = arith.constant 5.000000e-01 : f32
    %51 = vector.broadcast %cst_30 : f32 to vector<8x16x32xf32>
    %52 = arith.addf %25, %51 : vector<8x16x32xf32>
    %53 = math.absf %25 : vector<8x16x32xf32>
    %cst_31 = arith.constant 0.000000e+00 : f32
    %54 = vector.broadcast %cst_31 : f32 to vector<8x16x32xf32>
    %55 = arith.subf %54, %53 : vector<8x16x32xf32>
    %56 = math.exp %55 : vector<8x16x32xf32>
    %cst_32 = arith.constant 1.000000e+00 : f32
    %57 = vector.broadcast %cst_32 : f32 to vector<8x16x32xf32>
    %58 = arith.addf %57, %56 : vector<8x16x32xf32>
    %59 = tpu.reciprocal %58 {approx = true} : vector<8x16x32xf32> -> vector<8x16x32xf32>
    %cst_33 = arith.constant 0.000000e+00 : f32
    %60 = vector.broadcast %cst_33 : f32 to vector<8x16x32xf32>
    %61 = arith.cmpf oge, %25, %60 : vector<8x16x32xf32>
    %62 = arith.mulf %56, %59 : vector<8x16x32xf32>
    %63 = arith.select %61, %59, %62 : vector<8x16x32xi1>, vector<8x16x32xf32>
    %64 = arith.select %50, %52, %63 : vector<8x16x32xi1>, vector<8x16x32xf32>
    %65 = arith.mulf %48, %64 : vector<8x16x32xf32>
    %c0_34 = arith.constant 0 : index
    %c0_35 = arith.constant 0 : index
    %c0_36 = arith.constant 0 : index
    %66 = vector.load %arg10[%c0_34, %c0_35, %c0_36] : memref<8x16x32xf32, #tpu.memory_space<vmem>>, vector<8x16x32xf32>
    tpu.vector_store %arg10[%c0_34, %c0_35, %c0_36], %65 {strides = array<i32>} : memref<8x16x32xf32, #tpu.memory_space<vmem>>, vector<8x16x32xf32>,
    %c0_i32 = arith.constant 0 : i32
    %67 = arith.cmpi eq, %arg2, %c0_i32 : i32
    %68 = arith.extui %67 : i1 to i32
    %c0_i32_37 = arith.constant 0 : i32
    %69 = arith.cmpi ne, %68, %c0_i32_37 : i32
    scf.if %69 {
      %c0_91 = arith.constant 0 : index
      %c0_92 = arith.constant 0 : index
      %c0_93 = arith.constant 0 : index
      %168 = vector.load %arg4[%c0_91, %c0_92, %c0_93] : memref<1x16x32xf32, #tpu.memory_space<vmem>>, vector<1x16x32xf32>
      %169 = vector.shape_cast %168 : vector<1x16x32xf32> to vector<16x32xf32>
      %cst_94 = arith.constant 0.000000e+00 : f32
      %170 = vector.broadcast %cst_94 : f32 to vector<16x32xf32>
      %171 = arith.cmpf oge, %169, %170 : vector<16x32xf32>
      %cst_95 = arith.constant 5.000000e-01 : f32
      %172 = vector.broadcast %cst_95 : f32 to vector<16x32xf32>
      %173 = arith.addf %169, %172 : vector<16x32xf32>
      %174 = math.absf %169 : vector<16x32xf32>
      %cst_96 = arith.constant 0.000000e+00 : f32
      %175 = vector.broadcast %cst_96 : f32 to vector<16x32xf32>
      %176 = arith.subf %175, %174 : vector<16x32xf32>
      %177 = math.exp %176 : vector<16x32xf32>
      %cst_97 = arith.constant 1.000000e+00 : f32
      %178 = vector.broadcast %cst_97 : f32 to vector<16x32xf32>
      %179 = arith.addf %178, %177 : vector<16x32xf32>
      %180 = tpu.reciprocal %179 {approx = true} : vector<16x32xf32> -> vector<16x32xf32>
      %cst_98 = arith.constant 0.000000e+00 : f32
      %181 = vector.broadcast %cst_98 : f32 to vector<16x32xf32>
      %182 = arith.cmpf oge, %169, %181 : vector<16x32xf32>
      %183 = arith.mulf %177, %180 : vector<16x32xf32>
      %184 = arith.select %182, %180, %183 : vector<16x32xi1>, vector<16x32xf32>
      %185 = arith.select %171, %173, %184 : vector<16x32xi1>, vector<16x32xf32>
      %c0_99 = arith.constant 0 : index
      %c0_100 = arith.constant 0 : index
      %186 = vector.load %arg8[%c0_99, %c0_100] : memref<16x32xf32, #tpu.memory_space<vmem>>, vector<16x32xf32>
      tpu.vector_store %arg8[%c0_99, %c0_100], %185 {strides = array<i32>} : memref<16x32xf32, #tpu.memory_space<vmem>>, vector<16x32xf32>,
    } else {
    }
    %c0_38 = arith.constant 0 : index
    %c0_39 = arith.constant 0 : index
    %70 = vector.load %arg8[%c0_38, %c0_39] : memref<16x32xf32, #tpu.memory_space<vmem>>, vector<16x32xf32>
    %c0_i32_40 = arith.constant 0 : i32
    %71 = arith.index_cast %c0_i32_40 : i32 to index
    %c0_41 = arith.constant 0 : index
    %c0_42 = arith.constant 0 : index
    %72 = vector.load %arg9[%71, %c0_41, %c0_42] : memref<8x16x32xf32, #tpu.memory_space<vmem>>, vector<1x16x32xf32>
    %73 = vector.shape_cast %72 : vector<1x16x32xf32> to vector<16x32xf32>
    %74 = arith.mulf %73, %70 : vector<16x32xf32>
    %75 = arith.index_cast %c0_i32_40 : i32 to index
    %c0_43 = arith.constant 0 : index
    %c0_44 = arith.constant 0 : index
    %76 = vector.load %arg10[%75, %c0_43, %c0_44] : memref<8x16x32xf32, #tpu.memory_space<vmem>>, vector<1x16x32xf32>
    %77 = vector.shape_cast %76 : vector<1x16x32xf32> to vector<16x32xf32>
    %78 = arith.addf %74, %77 : vector<16x32xf32>
    %79 = arith.index_cast %c0_i32_40 : i32 to index
    %c0_45 = arith.constant 0 : index
    %c0_46 = arith.constant 0 : index
    %80 = vector.load %arg7[%79, %c0_45, %c0_46] : memref<8x16x32xf32, #tpu.memory_space<vmem>>, vector<1x16x32xf32>
    %81 = vector.shape_cast %80 : vector<1x16x32xf32> to vector<16x32xf32>
    %82 = vector.shape_cast %78 : vector<16x32xf32> to vector<1x16x32xf32>
    tpu.vector_store %arg7[%79, %c0_45, %c0_46], %82 {strides = array<i32>} : memref<8x16x32xf32, #tpu.memory_space<vmem>>, vector<1x16x32xf32>,
    %c1_i32 = arith.constant 1 : i32
    %83 = arith.index_cast %c1_i32 : i32 to index
    %c0_47 = arith.constant 0 : index
    %c0_48 = arith.constant 0 : index
    %84 = vector.load %arg9[%83, %c0_47, %c0_48] : memref<8x16x32xf32, #tpu.memory_space<vmem>>, vector<1x16x32xf32>
    %85 = vector.shape_cast %84 : vector<1x16x32xf32> to vector<16x32xf32>
    %86 = arith.mulf %85, %78 : vector<16x32xf32>
    %87 = arith.index_cast %c1_i32 : i32 to index
    %c0_49 = arith.constant 0 : index
    %c0_50 = arith.constant 0 : index
    %88 = vector.load %arg10[%87, %c0_49, %c0_50] : memref<8x16x32xf32, #tpu.memory_space<vmem>>, vector<1x16x32xf32>
    %89 = vector.shape_cast %88 : vector<1x16x32xf32> to vector<16x32xf32>
    %90 = arith.addf %86, %89 : vector<16x32xf32>
    %91 = arith.index_cast %c1_i32 : i32 to index
    %c0_51 = arith.constant 0 : index
    %c0_52 = arith.constant 0 : index
    %92 = vector.load %arg7[%91, %c0_51, %c0_52] : memref<8x16x32xf32, #tpu.memory_space<vmem>>, vector<1x16x32xf32>
    %93 = vector.shape_cast %92 : vector<1x16x32xf32> to vector<16x32xf32>
    %94 = vector.shape_cast %90 : vector<16x32xf32> to vector<1x16x32xf32>
    tpu.vector_store %arg7[%91, %c0_51, %c0_52], %94 {strides = array<i32>} : memref<8x16x32xf32, #tpu.memory_space<vmem>>, vector<1x16x32xf32>,
    %c2_i32 = arith.constant 2 : i32
    %95 = arith.index_cast %c2_i32 : i32 to index
    %c0_53 = arith.constant 0 : index
    %c0_54 = arith.constant 0 : index
    %96 = vector.load %arg9[%95, %c0_53, %c0_54] : memref<8x16x32xf32, #tpu.memory_space<vmem>>, vector<1x16x32xf32>
    %97 = vector.shape_cast %96 : vector<1x16x32xf32> to vector<16x32xf32>
    %98 = arith.mulf %97, %90 : vector<16x32xf32>
    %99 = arith.index_cast %c2_i32 : i32 to index
    %c0_55 = arith.constant 0 : index
    %c0_56 = arith.constant 0 : index
    %100 = vector.load %arg10[%99, %c0_55, %c0_56] : memref<8x16x32xf32, #tpu.memory_space<vmem>>, vector<1x16x32xf32>
    %101 = vector.shape_cast %100 : vector<1x16x32xf32> to vector<16x32xf32>
    %102 = arith.addf %98, %101 : vector<16x32xf32>
    %103 = arith.index_cast %c2_i32 : i32 to index
    %c0_57 = arith.constant 0 : index
    %c0_58 = arith.constant 0 : index
    %104 = vector.load %arg7[%103, %c0_57, %c0_58] : memref<8x16x32xf32, #tpu.memory_space<vmem>>, vector<1x16x32xf32>
    %105 = vector.shape_cast %104 : vector<1x16x32xf32> to vector<16x32xf32>
    %106 = vector.shape_cast %102 : vector<16x32xf32> to vector<1x16x32xf32>
    tpu.vector_store %arg7[%103, %c0_57, %c0_58], %106 {strides = array<i32>} : memref<8x16x32xf32, #tpu.memory_space<vmem>>, vector<1x16x32xf32>,
    %c3_i32 = arith.constant 3 : i32
    %107 = arith.index_cast %c3_i32 : i32 to index
    %c0_59 = arith.constant 0 : index
    %c0_60 = arith.constant 0 : index
    %108 = vector.load %arg9[%107, %c0_59, %c0_60] : memref<8x16x32xf32, #tpu.memory_space<vmem>>, vector<1x16x32xf32>
    %109 = vector.shape_cast %108 : vector<1x16x32xf32> to vector<16x32xf32>
    %110 = arith.mulf %109, %102 : vector<16x32xf32>
    %111 = arith.index_cast %c3_i32 : i32 to index
    %c0_61 = arith.constant 0 : index
    %c0_62 = arith.constant 0 : index
    %112 = vector.load %arg10[%111, %c0_61, %c0_62] : memref<8x16x32xf32, #tpu.memory_space<vmem>>, vector<1x16x32xf32>
    %113 = vector.shape_cast %112 : vector<1x16x32xf32> to vector<16x32xf32>
    %114 = arith.addf %110, %113 : vector<16x32xf32>
    %115 = arith.index_cast %c3_i32 : i32 to index
    %c0_63 = arith.constant 0 : index
    %c0_64 = arith.constant 0 : index
    %116 = vector.load %arg7[%115, %c0_63, %c0_64] : memref<8x16x32xf32, #tpu.memory_space<vmem>>, vector<1x16x32xf32>
    %117 = vector.shape_cast %116 : vector<1x16x32xf32> to vector<16x32xf32>
    %118 = vector.shape_cast %114 : vector<16x32xf32> to vector<1x16x32xf32>
    tpu.vector_store %arg7[%115, %c0_63, %c0_64], %118 {strides = array<i32>} : memref<8x16x32xf32, #tpu.memory_space<vmem>>, vector<1x16x32xf32>,
    %c4_i32 = arith.constant 4 : i32
    %119 = arith.index_cast %c4_i32 : i32 to index
    %c0_65 = arith.constant 0 : index
    %c0_66 = arith.constant 0 : index
    %120 = vector.load %arg9[%119, %c0_65, %c0_66] : memref<8x16x32xf32, #tpu.memory_space<vmem>>, vector<1x16x32xf32>
    %121 = vector.shape_cast %120 : vector<1x16x32xf32> to vector<16x32xf32>
    %122 = arith.mulf %121, %114 : vector<16x32xf32>
    %123 = arith.index_cast %c4_i32 : i32 to index
    %c0_67 = arith.constant 0 : index
    %c0_68 = arith.constant 0 : index
    %124 = vector.load %arg10[%123, %c0_67, %c0_68] : memref<8x16x32xf32, #tpu.memory_space<vmem>>, vector<1x16x32xf32>
    %125 = vector.shape_cast %124 : vector<1x16x32xf32> to vector<16x32xf32>
    %126 = arith.addf %122, %125 : vector<16x32xf32>
    %127 = arith.index_cast %c4_i32 : i32 to index
    %c0_69 = arith.constant 0 : index
    %c0_70 = arith.constant 0 : index
    %128 = vector.load %arg7[%127, %c0_69, %c0_70] : memref<8x16x32xf32, #tpu.memory_space<vmem>>, vector<1x16x32xf32>
    %129 = vector.shape_cast %128 : vector<1x16x32xf32> to vector<16x32xf32>
    %130 = vector.shape_cast %126 : vector<16x32xf32> to vector<1x16x32xf32>
    tpu.vector_store %arg7[%127, %c0_69, %c0_70], %130 {strides = array<i32>} : memref<8x16x32xf32, #tpu.memory_space<vmem>>, vector<1x16x32xf32>,
    %c5_i32 = arith.constant 5 : i32
    %131 = arith.index_cast %c5_i32 : i32 to index
    %c0_71 = arith.constant 0 : index
    %c0_72 = arith.constant 0 : index
    %132 = vector.load %arg9[%131, %c0_71, %c0_72] : memref<8x16x32xf32, #tpu.memory_space<vmem>>, vector<1x16x32xf32>
    %133 = vector.shape_cast %132 : vector<1x16x32xf32> to vector<16x32xf32>
    %134 = arith.mulf %133, %126 : vector<16x32xf32>
    %135 = arith.index_cast %c5_i32 : i32 to index
    %c0_73 = arith.constant 0 : index
    %c0_74 = arith.constant 0 : index
    %136 = vector.load %arg10[%135, %c0_73, %c0_74] : memref<8x16x32xf32, #tpu.memory_space<vmem>>, vector<1x16x32xf32>
    %137 = vector.shape_cast %136 : vector<1x16x32xf32> to vector<16x32xf32>
    %138 = arith.addf %134, %137 : vector<16x32xf32>
    %139 = arith.index_cast %c5_i32 : i32 to index
    %c0_75 = arith.constant 0 : index
    %c0_76 = arith.constant 0 : index
    %140 = vector.load %arg7[%139, %c0_75, %c0_76] : memref<8x16x32xf32, #tpu.memory_space<vmem>>, vector<1x16x32xf32>
    %141 = vector.shape_cast %140 : vector<1x16x32xf32> to vector<16x32xf32>
    %142 = vector.shape_cast %138 : vector<16x32xf32> to vector<1x16x32xf32>
    tpu.vector_store %arg7[%139, %c0_75, %c0_76], %142 {strides = array<i32>} : memref<8x16x32xf32, #tpu.memory_space<vmem>>, vector<1x16x32xf32>,
    %c6_i32 = arith.constant 6 : i32
    %143 = arith.index_cast %c6_i32 : i32 to index
    %c0_77 = arith.constant 0 : index
    %c0_78 = arith.constant 0 : index
    %144 = vector.load %arg9[%143, %c0_77, %c0_78] : memref<8x16x32xf32, #tpu.memory_space<vmem>>, vector<1x16x32xf32>
    %145 = vector.shape_cast %144 : vector<1x16x32xf32> to vector<16x32xf32>
    %146 = arith.mulf %145, %138 : vector<16x32xf32>
    %147 = arith.index_cast %c6_i32 : i32 to index
    %c0_79 = arith.constant 0 : index
    %c0_80 = arith.constant 0 : index
    %148 = vector.load %arg10[%147, %c0_79, %c0_80] : memref<8x16x32xf32, #tpu.memory_space<vmem>>, vector<1x16x32xf32>
    %149 = vector.shape_cast %148 : vector<1x16x32xf32> to vector<16x32xf32>
    %150 = arith.addf %146, %149 : vector<16x32xf32>
    %151 = arith.index_cast %c6_i32 : i32 to index
    %c0_81 = arith.constant 0 : index
    %c0_82 = arith.constant 0 : index
    %152 = vector.load %arg7[%151, %c0_81, %c0_82] : memref<8x16x32xf32, #tpu.memory_space<vmem>>, vector<1x16x32xf32>
    %153 = vector.shape_cast %152 : vector<1x16x32xf32> to vector<16x32xf32>
    %154 = vector.shape_cast %150 : vector<16x32xf32> to vector<1x16x32xf32>
    tpu.vector_store %arg7[%151, %c0_81, %c0_82], %154 {strides = array<i32>} : memref<8x16x32xf32, #tpu.memory_space<vmem>>, vector<1x16x32xf32>,
    %c7_i32 = arith.constant 7 : i32
    %155 = arith.index_cast %c7_i32 : i32 to index
    %c0_83 = arith.constant 0 : index
    %c0_84 = arith.constant 0 : index
    %156 = vector.load %arg9[%155, %c0_83, %c0_84] : memref<8x16x32xf32, #tpu.memory_space<vmem>>, vector<1x16x32xf32>
    %157 = vector.shape_cast %156 : vector<1x16x32xf32> to vector<16x32xf32>
    %158 = arith.mulf %157, %150 : vector<16x32xf32>
    %159 = arith.index_cast %c7_i32 : i32 to index
    %c0_85 = arith.constant 0 : index
    %c0_86 = arith.constant 0 : index
    %160 = vector.load %arg10[%159, %c0_85, %c0_86] : memref<8x16x32xf32, #tpu.memory_space<vmem>>, vector<1x16x32xf32>
    %161 = vector.shape_cast %160 : vector<1x16x32xf32> to vector<16x32xf32>
    %162 = arith.addf %158, %161 : vector<16x32xf32>
    %163 = arith.index_cast %c7_i32 : i32 to index
    %c0_87 = arith.constant 0 : index
    %c0_88 = arith.constant 0 : index
    %164 = vector.load %arg7[%163, %c0_87, %c0_88] : memref<8x16x32xf32, #tpu.memory_space<vmem>>, vector<1x16x32xf32>
    %165 = vector.shape_cast %164 : vector<1x16x32xf32> to vector<16x32xf32>
    %166 = vector.shape_cast %162 : vector<16x32xf32> to vector<1x16x32xf32>
    tpu.vector_store %arg7[%163, %c0_87, %c0_88], %166 {strides = array<i32>} : memref<8x16x32xf32, #tpu.memory_space<vmem>>, vector<1x16x32xf32>,
    %c8_i32 = arith.constant 8 : i32
    %c0_89 = arith.constant 0 : index
    %c0_90 = arith.constant 0 : index
    %167 = vector.load %arg8[%c0_89, %c0_90] : memref<16x32xf32, #tpu.memory_space<vmem>>, vector<16x32xf32>
    tpu.vector_store %arg8[%c0_89, %c0_90], %162 {strides = array<i32>} : memref<16x32xf32, #tpu.memory_space<vmem>>, vector<16x32xf32>,
    return
  }
  func.func @transform_0(%arg0: i32, %arg1: i32, %arg2: i32) -> (i32, i32, i32) {
    %c0_i32 = arith.constant 0 : i32
    %c0_i32_0 = arith.constant 0 : i32
    return %arg2, %arg0, %c0_i32 : i32, i32, i32
  }
  func.func @transform_1(%arg0: i32, %arg1: i32, %arg2: i32) -> (i32, i32, i32) {
    %c0_i32 = arith.constant 0 : i32
    %c0_i32_0 = arith.constant 0 : i32
    return %c0_i32, %arg0, %arg1 : i32, i32, i32
  }
  func.func @transform_2(%arg0: i32, %arg1: i32, %arg2: i32) -> (i32, i32, i32) {
    %c0_i32 = arith.constant 0 : i32
    %c0_i32_0 = arith.constant 0 : i32
    %c0_i32_1 = arith.constant 0 : i32
    return %c0_i32, %c0_i32_0, %arg1 : i32, i32, i32
  }
  func.func @transform_3(%arg0: i32, %arg1: i32, %arg2: i32) -> (i32, i32, i32) {
    %c0_i32 = arith.constant 0 : i32
    %c0_i32_0 = arith.constant 0 : i32
    %c0_i32_1 = arith.constant 0 : i32
    return %c0_i32, %c0_i32_0, %arg1 : i32, i32, i32
  }
  func.func @transform_4(%arg0: i32, %arg1: i32, %arg2: i32) -> (i32, i32, i32) {
    %c0_i32 = arith.constant 0 : i32
    return %arg2, %arg0, %arg1 : i32, i32, i32
  }
}

</mosaic_0001>

<bundles_post_ra>
// kernel: minlstm_forward.1
= control target key start
LH: loop header
LB: loop body
LE: loop exit
PB: predicated region body
PF: predicated region fallthrough
CT: control target
= control target key end

     0   :  { %vm97_vm0 = vcmask 261120   ;;  %s2272_s2 = inlined_call_operand.vmem [shape: bf16[3,32,32], index: 2, kind: input, shape index: {}]   ;;  %s2273_s0 = inlined_call_operand.vmem [shape: bf16[8,16,32], index: 0, kind: input, shape index: {}]   ;;  %s2274_s1 = inlined_call_operand.vmem [shape: f32[1,16,32], index: 1, kind: input, shape index: {}]   ;;  %s2275_s3 = inlined_call_operand.vmem [shape: f32[3,1,32], index: 3, kind: input, shape index: {}]   ;;  %s2276_s4 = inlined_call_operand.vmem [shape: f32[8,16,32], index: 4, kind: output, shape index: {}]  }
   0x1   :  { %v1255_v0 = vld [vmem:[%s2272_s2] sm:$0xff]   ;;  %v1256_v1 = vld [vmem:[%s2272_s2 + $0x8] sm:$0xff]   ;;  %v1261_v6 = vld [vmem:[%s2272_s2 + $0x10] sm:$0xff]  }
   0x2   :  { %1191 = vmatprep.subr.bf16.mxu0 %v1255_v0  ;;  %1251 = vmatprep.subr.bf16.mxu1 %v1255_v0  ;;  %v1257_v2 = vld [vmem:[%s2273_s0] sm:$0xff]   ;;  %v1259_v4 = vld [vmem:[%s2273_s0 + $0x8] sm:$0xff]   ;;  %v1263_v8 = vld [vmem:[%s2273_s0 + $0x10] sm:$0xff]  }
   0x3   :  { %1192 = vmatpush3.bf16.msra.mxu0 %v1255_v0  ;;  %1253 = vmatpush3.bf16.msra.mxu1 %v1255_v0  ;;  %v1258_v3 = vld [vmem:[%s2273_s0 + $0x20] sm:$0xff]   ;;  %v1260_v5 = vld [vmem:[%s2273_s0 + $0x28] sm:$0xff]   ;;  %v1264_v9 = vld [vmem:[%s2273_s0 + $0x30] sm:$0xff]  }
   0x4   :  { %1193 = vmatprep.subr.bf16.mxu0 %v1256_v1  ;;  %1252 = vmatprep.subr.bf16.mxu1 %v1256_v1  ;;  %v1262_v7 = vld [vmem:[%s2272_s2 + $0x20] sm:$0xff]   ;;  %v1267_v10 = vld [vmem:[%s2272_s2 + $0x18] sm:$0xff]   ;;  %v1268_v11 = vld [vmem:[%s2272_s2 + $0x28] sm:$0xff]  }
   0x5   :  { %1195 = vmatprep.mubr.msk.bf16.mxu0 %vm97_vm0, %v1257_v2  ;;  %1203 = vmatprep.mubr.msk.bf16.mxu1 %vm97_vm0, %v1258_v3  ;;  %v1265_v12 = vld [vmem:[%s2273_s0 + $0x18] sm:$0xff]   ;;  %v963_v14 = vld [vmem:[%s2274_s1] sm:$0xff]  ;;  %v964_v18 = vld [vmem:[%s2274_s1 + $0x8] sm:$0xff] }
   0x6   :  { %v1266_v13 = vld [vmem:[%s2273_s0 + $0x38] sm:$0xff]   ;;  %v969_v15 = vand.u32 2147483647, %v963_v14  ;;  %v970_v19 = vand.u32 2147483647, %v964_v18  ;;  %v967_v27 = vadd.f32 0.5, %v963_v14 }
   0x7   :  { %1194 = vmatpush3.bf16.msra.mxu0 %v1256_v1  ;;  %1254 = vmatpush3.bf16.msra.mxu1 %v1256_v1  ;;  %vm965_vm1 = vcmp.ge.f32.partialorder %v963_v14, 0.0  ;;  %v968_v31 = vadd.f32 0.5, %v964_v18  ;;  %vm966_vm2 = vcmp.ge.f32.partialorder %v964_v18, 0.0  ;;  %v1572_v34 = vld [vmem:[%s2275_s3] ss:$0 sm:$0xff] }
   0x8   :  { %1211 = vmatprep.subr.bf16.mxu1 %v1261_v6  ;;  %1231 = vmatprep.subr.bf16.mxu0 %v1262_v7  ;;  %v971_v16 = vsub.f32 0.0, %v969_v15  ;;  %v972_v20 = vsub.f32 0.0, %v970_v19 }
   0xa   :  { %1196 = vmatmul.mubr.msk.bf16.vlgmr.msra.gmra.mrb[0].mxu0 %vm97_vm0, %v1259_v4  ;;  %1204 = vmatmul.mubr.msk.bf16.vlgmr.msra.gmra.mrb[0].mxu1 %vm97_vm0, %v1260_v5  ;;  %v973_v17 = vmul.f32 1.442695, %v971_v16  ;;  %v975_v21 = vmul.f32 1.442695, %v972_v20 }
   0xb   :  { %1212 = vmatpush3.bf16.msra.mxu1 %v1261_v6  ;;  %1232 = vmatpush3.bf16.msra.mxu0 %v1262_v7 }
   0xc   :  { %1199 = vmatprep.mubr.msk.bf16.mxu0 %vm97_vm0, %v1263_v8  ;;  %1207 = vmatprep.mubr.msk.bf16.mxu1 %vm97_vm0, %v1264_v9  ;;  %1269 = vpow2.f32 %v973_v17 }
   0xd   :  { %1213 = vmatprep.subr.bf16.mxu1 %v1267_v10  ;;  %1233 = vmatprep.subr.bf16.mxu0 %v1268_v11  ;;  %1271 = vpow2.f32 %v975_v21 }
   0xf   :  { %1214 = vmatpush3.bf16.msra.mxu1 %v1267_v10  ;;  %1234 = vmatpush3.bf16.msra.mxu0 %v1268_v11 }
  0x12   :  { %1200 = vmatmul.mubr.msk.bf16.gmra.mrb[4].mxu0 %vm97_vm0, %v1265_v12  ;;  %1208 = vmatmul.mubr.msk.bf16.gmra.mrb[4].mxu1 %vm97_vm0, %v1266_v13 }
  0x13   :  { %1215 = vmatprep.mubr.msk.bf16.mxu1 %vm97_vm0, %v1257_v2  ;;  %1235 = vmatprep.mubr.msk.bf16.mxu0 %vm97_vm0, %v1257_v2 }
  0x16   :  { %v1270_v22 = vpop.eup %1269 }
  0x17   :  { %v977_v23 = vadd.f32 1.0, %v1270_v22  ;;  %v1272_v24 = vpop.eup %1271 }
  0x18   :  { %v978_v25 = vadd.f32 1.0, %v1272_v24 }
  0x19   :  { %1273 = vrcp.f32 %v977_v23 }
  0x1a   :  { %1216 = vmatmul.mubr.msk.bf16.vlgmr.msra.gmra.mrb[8].mxu1 %vm97_vm0, %v1259_v4  ;;  %1236 = vmatmul.mubr.msk.bf16.vlgmr.msra.gmra.mrb[8].mxu0 %vm97_vm0, %v1259_v4  ;;  %1275 = vrcp.f32 %v978_v25 }
  0x1b   :  { %1219 = vmatprep.mubr.msk.bf16.mxu1 %vm97_vm0, %v1263_v8  ;;  %1239 = vmatprep.mubr.msk.bf16.mxu0 %vm97_vm0, %v1263_v8 }
  0x22   :  { %1220 = vmatmul.mubr.msk.bf16.gmra.mrb[12].mxu1 %vm97_vm0, %v1265_v12  ;;  %1240 = vmatmul.mubr.msk.bf16.gmra.mrb[12].mxu0 %vm97_vm0, %v1265_v12 }
  0x23   :  { %1223 = vmatprep.mubr.msk.bf16.mxu1 %vm97_vm0, %v1258_v3  ;;  %1243 = vmatprep.mubr.msk.bf16.mxu0 %vm97_vm0, %v1258_v3  ;;  %v1274_v26 = vpop.eup %1273 }
  0x24   :  { %v981_v28 = vmul.f32 %v1274_v26, %v1270_v22  ;;  %v1276_v30 = vpop.eup %1275 }
  0x25   :  { %v982_v32 = vmul.f32 %v1276_v30, %v1272_v24 }
  0x26   :  { %v983_v29 = vsel %vm965_vm1, %v967_v27, %v981_v28 }
  0x27   :  { %985 = vst.msk [vmem:[#allocation2] sm:$0xff] %vm97_vm0, %v983_v29  ;;  %v984_v33 = vsel %vm966_vm2, %v968_v31, %v982_v32 }
  0x28   :  { %986 = vst.msk [vmem:[#allocation2 + $0x8] sm:$0xff] %vm97_vm0, %v984_v33 }
  0x2a   :  { %1224 = vmatmul.mubr.msk.bf16.gmra.mrb[16].mxu1 %vm97_vm0, %v1260_v5  ;;  %1244 = vmatmul.mubr.msk.bf16.gmra.mrb[16].mxu0 %vm97_vm0, %v1260_v5 }
  0x2b   :  { %1227 = vmatprep.mubr.msk.bf16.mxu1 %vm97_vm0, %v1264_v9  ;;  %1247 = vmatprep.mubr.msk.bf16.mxu0 %vm97_vm0, %v1264_v9 }
  0x32   :  { %1228 = vmatmul.mubr.msk.bf16.gmra.mrb[20].mxu1 %vm97_vm0, %v1266_v13  ;;  %1248 = vmatmul.mubr.msk.bf16.gmra.mrb[20].mxu0 %vm97_vm0, %v1266_v13 }
  0xdd   :  { %v1197_v35 = vpop.f32.mrb[0].mxu0  ;;  %v1205_v36 = vpop.f32.mrb[0].mxu1 }
  0xde   :  { %v1575_v37 = vadd.f32 %v1197_v35, %v1572_v34  ;;  %v1578_v38 = vadd.f32 %v1205_v36, %v1572_v34  ;;  %v156_v39 = vpop.f32.mrb[1].mxu0  ;;  %v188_v40 = vpop.f32.mrb[1].mxu1 }
  0xdf   :  { %v1581_v41 = vadd.f32 %v1572_v34, %v156_v39  ;;  %v1584_v42 = vadd.f32 %v1572_v34, %v188_v40  ;;  %v1198_v43 = vpop.f32.mrb[2].mxu0  ;;  %v1206_v44 = vpop.f32.mrb[2].mxu1 }
  0xe0   :  { %v465_v45 = vand.u32 2147483647, %v1575_v37  ;;  %v473_v46 = vand.u32 2147483647, %v1578_v38  ;;  %v1591_v51 = vadd.f32 %v1198_v43, %v1572_v34  ;;  %v1594_v52 = vadd.f32 %v1206_v44, %v1572_v34  ;;  %v159_v53 = vpop.f32.mrb[3].mxu0  ;;  %v191_v54 = vpop.f32.mrb[3].mxu1 }
  0xe1   :  { %v463_v47 = vand.u32 2147483647, %v1581_v41  ;;  %v471_v48 = vand.u32 2147483647, %v1584_v42  ;;  %v1597_v57 = vadd.f32 %v1572_v34, %v159_v53  ;;  %v1600_v58 = vadd.f32 %v1572_v34, %v191_v54 }
  0xe2   :  { %v481_v49 = vsub.f32 0.0, %v465_v45  ;;  %v489_v50 = vsub.f32 0.0, %v473_v46  ;;  %v466_v61 = vand.u32 2147483647, %v1591_v51  ;;  %v474_v1 = vand.u32 2147483647, %v1594_v52 }
  0xe3   :  { %v479_v55 = vsub.f32 0.0, %v463_v47  ;;  %v487_v56 = vsub.f32 0.0, %v471_v48  ;;  %v464_v2 = vand.u32 2147483647, %v1597_v57  ;;  %v472_v4 = vand.u32 2147483647, %v1600_v58 }
  0xe4   :  { %v499_v59 = vmul.f32 1.442695, %v481_v49  ;;  %v515_v60 = vmul.f32 1.442695, %v489_v50  ;;  %v482_v0 = vsub.f32 0.0, %v466_v61  ;;  %v490_v8 = vsub.f32 0.0, %v474_v1 }
  0xe5   :  { %v495_v62 = vmul.f32 1.442695, %v479_v55  ;;  %v511_v63 = vmul.f32 1.442695, %v487_v56  ;;  %v1201_v3 = vpop.f32.mrb[4].mxu0  ;;  %v1209_v5 = vpop.f32.mrb[4].mxu1 }
  0xe6   :  { %1277 = vpow2.f32 %v499_v59  ;;  %v172_v6 = vpop.f32.mrb[5].mxu0  ;;  %v501_v7 = vmul.f32 1.442695, %v482_v0  ;;  %v480_v9 = vsub.f32 0.0, %v464_v2  ;;  %v204_v10 = vpop.f32.mrb[5].mxu1  ;;  %v488_v12 = vsub.f32 0.0, %v472_v4 }
  0xe7   :  { %1279 = vpow2.f32 %v515_v60  ;;  %v1202_v11 = vpop.f32.mrb[6].mxu0  ;;  %v1607_v13 = vadd.f32 %v1201_v3, %v1572_v34  ;;  %v1610_v14 = vadd.f32 %v1209_v5, %v1572_v34  ;;  %v1210_v15 = vpop.f32.mrb[6].mxu1  ;;  %v517_v17 = vmul.f32 1.442695, %v490_v8  ;;  %v1662_v0 = vld [vmem:[%s2275_s3 + $0x2] ss:$0 sm:$0xff] }
  0xe8   :  { %1281 = vpow2.f32 %v495_v62  ;;  %v175_v16 = vpop.f32.mrb[7].mxu0  ;;  %v497_v18 = vmul.f32 1.442695, %v480_v9  ;;  %v1613_v19 = vadd.f32 %v1572_v34, %v172_v6  ;;  %v207_v20 = vpop.f32.mrb[7].mxu1  ;;  %v513_v21 = vmul.f32 1.442695, %v488_v12 }
  0xe9   :  { %1283 = vpow2.f32 %v511_v63  ;;  %v469_v22 = vand.u32 2147483647, %v1607_v13  ;;  %v477_v23 = vand.u32 2147483647, %v1610_v14  ;;  %v1619_v26 = vadd.f32 %v1572_v34, %v204_v10  ;;  %v1657_v63 = vld [vmem:[%s2275_s3 + $0x1] ss:$0 sm:$0xff] }
  0xea   :  { %1285 = vpow2.f32 %v501_v7  ;;  %v467_v24 = vand.u32 2147483647, %v1613_v19  ;;  %v1622_v27 = vadd.f32 %v1202_v11, %v1572_v34  ;;  %v1625_v31 = vadd.f32 %v1210_v15, %v1572_v34 }
  0xeb   :  { %1287 = vpow2.f32 %v517_v17  ;;  %v485_v25 = vsub.f32 0.0, %v469_v22  ;;  %v493_v30 = vsub.f32 0.0, %v477_v23  ;;  %v475_v36 = vand.u32 2147483647, %v1619_v26 }
  0xec   :  { %1289 = vpow2.f32 %v497_v18  ;;  %v483_v43 = vsub.f32 0.0, %v467_v24  ;;  %v470_v44 = vand.u32 2147483647, %v1622_v27  ;;  %v1637_v48 = vadd.f32 %v1572_v34, %v175_v16 }
  0xed   :  { %v1217_v28 = vpop.f32.mrb[8].mxu1  ;;  %v1237_v29 = vpop.f32.mrb[8].mxu0  ;;  %1291 = vpow2.f32 %v513_v21  ;;  %v507_v35 = vmul.f32 1.442695, %v485_v25  ;;  %v523_v40 = vmul.f32 1.442695, %v493_v30  ;;  %v1676_v11 = vadd.f32 %v1572_v34, %v207_v20 }
  0xee   :  { %v278_v32 = vpop.f32.mrb[9].mxu1  ;;  %v1627_v33 = vpop.f32.mrb[9].mxu0  ;;  %v491_v47 = vsub.f32 0.0, %v475_v36  ;;  %v478_v55 = vand.u32 2147483647, %v1625_v31  ;;  %v486_v62 = vsub.f32 0.0, %v470_v44  ;;  %v1679_v12 = vadd.f32 %v1217_v28, %v1657_v63 }
  0xef   :  { %1293 = vpow2.f32 %v507_v35  ;;  %v1639_v49 = vpop.f32.mrb[10].mxu1  ;;  %v1641_v50 = vpop.f32.mrb[10].mxu0  ;;  %v503_v3 = vmul.f32 1.442695, %v483_v43  ;;  %v468_v6 = vand.u32 2147483647, %v1637_v48  ;;  %v1690_v22 = vadd.f32 %v1237_v29, %v1662_v0 }
  0xf0   :  { %v1630_v39 = vpop.eup %1277  ;;  %1295 = vpow2.f32 %v523_v40  ;;  %v1647_v56 = vpop.f32.mrb[11].mxu1  ;;  %v519_v4 = vmul.f32 1.442695, %v491_v47  ;;  %v494_v10 = vsub.f32 0.0, %v478_v55  ;;  %vm561_vm3 = vcmp.ge.f32.partialorder %v1575_v37, 0.0 }
  0xf1   :  { %v1633_v45 = vpop.eup %1279  ;;  %v529_v46 = vadd.f32 1.0, %v1630_v39  ;;  %v1649_v59 = vpop.f32.mrb[11].mxu0  ;;  %v509_v21 = vmul.f32 1.442695, %v486_v62  ;;  %vm569_vm4 = vcmp.ge.f32.partialorder %v1578_v38, 0.0  ;;  %v1702_v28 = vadd.f32 %v1657_v63, %v278_v32 }
  0xf2   :  { %v1643_v53 = vpop.eup %1281  ;;  %v537_v54 = vadd.f32 1.0, %v1633_v45  ;;  %v476_v25 = vand.u32 2147483647, %v1676_v11  ;;  %v484_v35 = vsub.f32 0.0, %v468_v6  ;;  %v625_v36 = vand.u32 2147483647, %v1679_v12 }
  0xf3   :  { %v1651_v60 = vpop.eup %1283  ;;  %1297 = vrcp.f32 %v529_v46  ;;  %v527_v61 = vadd.f32 1.0, %v1643_v53  ;;  %vm559_vm5 = vcmp.ge.f32.partialorder %v1581_v41, 0.0  ;;  %vm567_vm6 = vcmp.ge.f32.partialorder %v1584_v42, 0.0 }
  0xf4   :  { %v1664_v1 = vpop.eup %1285  ;;  %1299 = vrcp.f32 %v537_v54  ;;  %v535_v2 = vadd.f32 1.0, %v1651_v60  ;;  %v492_v43 = vsub.f32 0.0, %v476_v25  ;;  %vm562_vm7 = vcmp.ge.f32.partialorder %v1591_v51, 0.0 }
  0xf5   :  { %1301 = vrcp.f32 %v527_v61  ;;  %v530_v5 = vadd.f32 1.0, %v1664_v1  ;;  %v1669_v7 = vpop.f32.mrb[12].mxu1  ;;  %v1671_v8 = vpop.f32.mrb[12].mxu0  ;;  %v641_v32 = vsub.f32 0.0, %v625_v36  ;;  %v801_v46 = vand.u32 2147483647, %v1690_v22 }
  0xf6   :  { %v1673_v9 = vpop.eup %1287  ;;  %1303 = vrcp.f32 %v535_v2  ;;  %v1681_v15 = vpop.f32.mrb[13].mxu1  ;;  %v525_v55 = vmul.f32 1.442695, %v494_v10  ;;  %v623_v61 = vand.u32 2147483647, %v1702_v28  ;;  %vm570_vm8 = vcmp.ge.f32.partialorder %v1594_v52, 0.0 }
  0xf7   :  { %v1683_v16 = vpop.f32.mrb[13].mxu0  ;;  %v1685_v17 = vpop.eup %1289  ;;  %1305 = vrcp.f32 %v530_v5  ;;  %v538_v18 = vadd.f32 1.0, %v1673_v9  ;;  %v817_v5 = vsub.f32 0.0, %v801_v46  ;;  %vm560_vm9 = vcmp.ge.f32.partialorder %v1597_v57, 0.0 }
  0xf8   :  { %v1692_v34 = vpop.f32.mrb[14].mxu1  ;;  %v1694_v20 = vpop.f32.mrb[14].mxu0  ;;  %v528_v24 = vadd.f32 1.0, %v1685_v17  ;;  %1307 = vpow2.f32 %v503_v3  ;;  %v505_v3 = vmul.f32 1.442695, %v484_v35  ;;  %v639_v10 = vsub.f32 0.0, %v623_v61 }
  0xf9   :  { %v1696_v23 = vpop.eup %1291  ;;  %v1704_v30 = vpop.f32.mrb[15].mxu1  ;;  %1309 = vrcp.f32 %v538_v18  ;;  %v1734_v35 = vadd.f32 %v1662_v0, %v1627_v33  ;;  %v835_v61 = vmul.f32 1.442695, %v817_v5  ;;  %vm568_vm10 = vcmp.ge.f32.partialorder %v1600_v58, 0.0 }
  0xfa   :  { %2277 = vst [vmem:[#allocation5_spill] sm:$0xff] %v1704_v30  ;;  %v536_v29 = vadd.f32 1.0, %v1696_v23  ;;  %v1708_v40 = vpop.f32.mrb[15].mxu0  ;;  %1311 = vrcp.f32 %v528_v24  ;;  %v1712_v44 = vpop.eup %1293  ;;  %vm565_vm11 = vcmp.ge.f32.partialorder %v1607_v13, 0.0  ;;  %vm573_vm12 = vcmp.ge.f32.partialorder %v1610_v14, 0.0 }
  0xfb   :  { %2278 = vst [vmem:[#allocation6_spill] sm:$0xff] %v1708_v40  ;;  %v1716_v47 = vpop.eup %1295  ;;  %v533_v54 = vadd.f32 1.0, %v1712_v44  ;;  %vm563_vm13 = vcmp.ge.f32.partialorder %v1613_v19, 0.0  ;;  %vm571_vm14 = vcmp.ge.f32.partialorder %v1619_v26, 0.0  ;;  %vm566_vm15 = vcmp.ge.f32.partialorder %v1622_v27, 0.0 }
  0xfc   :  { %1313 = vrcp.f32 %v536_v29  ;;  %v541_v2 = vadd.f32 1.0, %v1716_v47  ;;  %vm574_vm1 = vcmp.ge.f32.partialorder %v1625_v31, 0.0  ;;  %v1857_v19 = vadd.f32 %v1671_v8, %v1662_v0 }
  0xfd   :  { %1315 = vpow2.f32 %v519_v4  ;;  %v1298_v62 = vpop.eup %1297  ;;  %v1722_v6 = vpop.f32.mrb[16].mxu1  ;;  %v521_v4 = vmul.f32 1.442695, %v492_v43  ;;  %vm564_vm2 = vcmp.ge.f32.partialorder %v1637_v48, 0.0 }
  0xfe   :  { %1317 = vpow2.f32 %v509_v21  ;;  %v1724_v18 = vpop.f32.mrb[16].mxu0  ;;  %v1300_v24 = vpop.eup %1299  ;;  %v577_v25 = vmul.f32 %v1298_v62, %v1630_v39  ;;  %v659_v21 = vmul.f32 1.442695, %v641_v32  ;;  %v805_v8 = vand.u32 2147483647, %v1857_v19 }
  0xff   :  { %2279 = vst [vmem:[#allocation7_spill] sm:$0xff] %v1724_v18  ;;  %1319 = vrcp.f32 %v533_v54  ;;  %v1727_v29 = vpop.f32.mrb[17].mxu1  ;;  %v1729_v36 = vpop.f32.mrb[17].mxu0  ;;  %v585_v30 = vmul.f32 %v1300_v24, %v1633_v45 }
 0x100   :  { %2280 = vst [vmem:[#allocation8_spill] sm:$0xff] %v1729_v36  ;;  %v1302_v40 = vpop.eup %1301  ;;  %1321 = vrcp.f32 %v541_v2  ;;  %v1736_v46 = vpop.f32.mrb[18].mxu1  ;;  %v593_v43 = vsel %vm561_vm3, %v1298_v62, %v577_v25  ;;  %v655_v62 = vmul.f32 1.442695, %v639_v10  ;;  %vm572_vm3 = vcmp.ge.f32.partialorder %v1676_v11, 0.0 }
 0x101   :  { %v1738_v18 = vpop.f32.mrb[18].mxu0  ;;  %v1304_v39 = vpop.eup %1303  ;;  %v575_v54 = vmul.f32 %v1302_v40, %v1643_v53  ;;  %1323 = vpow2.f32 %v525_v55  ;;  %609 = vst.msk [vmem:[#allocation3 + $0x10] sm:$0xff] %vm97_vm0, %v593_v43  ;;  %v601_v33 = vsel %vm569_vm4, %v1300_v24, %v585_v30  ;;  %v799_v30 = vand.u32 2147483647, %v1734_v35 }
 0x102   :  { %v1743_v36 = vpop.f32.mrb[19].mxu1  ;;  %v1745_v45 = vpop.f32.mrb[19].mxu0  ;;  %v583_v2 = vmul.f32 %v1304_v39, %v1651_v60  ;;  %1325 = vpow2.f32 %v505_v3  ;;  %617 = vst.msk [vmem:[#allocation3 + $0x50] sm:$0xff] %vm97_vm0, %v601_v33  ;;  %vm721_vm4 = vcmp.ge.f32.partialorder %v1679_v12, 0.0  ;;  %v1919_v12 = vadd.f32 %v1694_v20, %v1662_v0 }
 0x103   :  { %v1306_v32 = vpop.eup %1305  ;;  %v591_v53 = vsel %vm559_vm5, %v1302_v40, %v575_v54  ;;  %1327 = vpow2.f32 %v521_v4  ;;  %v1769_v40 = vadd.f32 %v1639_v49, %v1657_v63  ;;  %v815_v25 = vsub.f32 0.0, %v799_v30 }
 0x104   :  { %v1752_v37 = vpop.eup %1307  ;;  %v578_v55 = vmul.f32 %v1306_v32, %v1664_v1  ;;  %607 = vst.msk [vmem:[#allocation3] sm:$0xff] %vm97_vm0, %v591_v53  ;;  %v599_v38 = vsel %vm567_vm6, %v1304_v39, %v583_v2  ;;  %1329 = vpow2.f32 %v659_v21  ;;  %v1775_v4 = vadd.f32 %v1641_v50, %v1662_v0 }
 0x105   :  { %v1310_v5 = vpop.eup %1309  ;;  %v531_v60 = vadd.f32 1.0, %v1752_v37  ;;  %615 = vst.msk [vmem:[#allocation3 + $0x40] sm:$0xff] %vm97_vm0, %v599_v38  ;;  %1331 = vpow2.f32 %v835_v61  ;;  %v1777_v51 = vpop.f32.mrb[20].mxu1  ;;  %v831_v61 = vmul.f32 1.442695, %v815_v25  ;;  %vm769_vm5 = vcmp.ge.f32.partialorder %v1690_v22, 0.0 }
 0x106   :  { %v1312_v3 = vpop.eup %1311  ;;  %v594_v41 = vsel %vm562_vm7, %v1306_v32, %v578_v55  ;;  %v586_v1 = vmul.f32 %v1310_v5, %v1673_v9  ;;  %v1779_v10 = vpop.f32.mrb[20].mxu0  ;;  %v802_v38 = vand.u32 2147483647, %v1775_v4  ;;  %vm719_vm6 = vcmp.ge.f32.partialorder %v1702_v28, 0.0 }
 0x107   :  { %v1314_v42 = vpop.eup %1313  ;;  %610 = vst.msk [vmem:[#allocation3 + $0x18] sm:$0xff] %vm97_vm0, %v594_v41  ;;  %v576_v24 = vmul.f32 %v1312_v3, %v1685_v17  ;;  %1333 = vrcp.f32 %v531_v60  ;;  %v626_v17 = vand.u32 2147483647, %v1769_v40  ;;  %v1787_v39 = vpop.f32.mrb[21].mxu1  ;;  %v1817_v41 = vadd.f32 %v1657_v63, %v1647_v56 }
 0x108   :  { %v1781_v9 = vpop.eup %1315  ;;  %v602_v49 = vsel %vm570_vm8, %v1310_v5, %v586_v1  ;;  %v584_v21 = vmul.f32 %v1314_v42, %v1696_v23  ;;  %1335 = vpow2.f32 %v655_v62  ;;  %v1789_v43 = vpop.f32.mrb[21].mxu0  ;;  %v818_v25 = vsub.f32 0.0, %v802_v38 }
 0x109   :  { %v1791_v50 = vpop.eup %1317  ;;  %618 = vst.msk [vmem:[#allocation3 + $0x58] sm:$0xff] %vm97_vm0, %v602_v49  ;;  %v592_v54 = vsel %vm560_vm9, %v1312_v3, %v576_v24  ;;  %v539_v52 = vadd.f32 1.0, %v1781_v9  ;;  %v1798_v23 = vpop.f32.mrb[22].mxu1  ;;  %v642_v55 = vsub.f32 0.0, %v626_v17  ;;  %v624_v14 = vand.u32 2147483647, %v1817_v41 }
 0x10a   :  { %v1800_v32 = vpop.f32.mrb[22].mxu0  ;;  %v1320_v33 = vpop.eup %1319  ;;  %608 = vst.msk [vmem:[#allocation3 + $0x8] sm:$0xff] %vm97_vm0, %v592_v54  ;;  %v600_v2 = vsel %vm568_vm10, %v1314_v42, %v584_v21  ;;  %v534_v53 = vadd.f32 1.0, %v1791_v50  ;;  %v837_v54 = vmul.f32 1.442695, %v818_v25  ;;  %vm767_vm7 = vcmp.ge.f32.partialorder %v1734_v35, 0.0 }
 0x10b   :  { %v1804_v62 = vpop.f32.mrb[23].mxu1  ;;  %v1806_v57 = vpop.f32.mrb[23].mxu0  ;;  %616 = vst.msk [vmem:[#allocation3 + $0x48] sm:$0xff] %vm97_vm0, %v600_v2  ;;  %v581_v58 = vmul.f32 %v1320_v33, %v1712_v44  ;;  %1337 = vrcp.f32 %v539_v52  ;;  %v661_v3 = vmul.f32 1.442695, %v642_v55  ;;  %v1837_v52 = vadd.f32 %v1662_v0, %v1649_v59 }
 0x10c   :  { %v1322_v5 = vpop.eup %1321  ;;  %1339 = vrcp.f32 %v534_v53  ;;  %v640_v2 = vsub.f32 0.0, %v624_v14  ;;  %v1842_v53 = vadd.f32 %v1669_v7, %v1657_v63  ;;  %v806_v20 = vand.u32 2147483647, %v1919_v12 }
 0x10d   :  { %v1812_v60 = vpop.eup %1323  ;;  %v589_v30 = vmul.f32 %v1322_v5, %v1716_v47  ;;  %v597_v42 = vsel %vm565_vm11, %v1320_v33, %v581_v58  ;;  %1341 = vpow2.f32 %v831_v61  ;;  %v800_v7 = vand.u32 2147483647, %v1837_v52 }
 0x10e   :  { %v1819_v1 = vpop.eup %1325  ;;  %v542_v13 = vadd.f32 1.0, %v1812_v60  ;;  %613 = vst.msk [vmem:[#allocation3 + $0x30] sm:$0xff] %vm97_vm0, %v597_v42  ;;  %1343 = vpow2.f32 %v661_v3  ;;  %v657_v58 = vmul.f32 1.442695, %v640_v2  ;;  %v821_v2 = vsub.f32 0.0, %v805_v8 }
 0x10f   :  { %v1823_v44 = vpop.eup %1327  ;;  %v605_v24 = vsel %vm573_vm12, %v1322_v5, %v589_v30  ;;  %v532_v47 = vadd.f32 1.0, %v1819_v1  ;;  %v629_v30 = vand.u32 2147483647, %v1842_v53  ;;  %vm722_vm8 = vcmp.ge.f32.partialorder %v1769_v40, 0.0 }
 0x110   :  { %v1827_v49 = vpop.eup %1329  ;;  %621 = vst.msk [vmem:[#allocation3 + $0x70] sm:$0xff] %vm97_vm0, %v605_v24  ;;  %1345 = vrcp.f32 %v542_v13  ;;  %v540_v56 = vadd.f32 1.0, %v1823_v44  ;;  %v816_v24 = vsub.f32 0.0, %v800_v7  ;;  %v843_v7 = vmul.f32 1.442695, %v821_v2  ;;  %v987_v2 = vld [vmem:[#allocation2] sm:$0xff] }
 0x111   :  { %v1832_v21 = vpop.eup %1331  ;;  %1347 = vrcp.f32 %v532_v47  ;;  %v689_v17 = vadd.f32 1.0, %v1827_v49  ;;  %v645_v47 = vsub.f32 0.0, %v629_v30  ;;  %vm770_vm9 = vcmp.ge.f32.partialorder %v1775_v4, 0.0 }
 0x112   :  { %v1334_v61 = vpop.eup %1333  ;;  %1349 = vrcp.f32 %v540_v56  ;;  %v865_v33 = vadd.f32 1.0, %v1832_v21  ;;  %vm720_vm10 = vcmp.ge.f32.partialorder %v1817_v41, 0.0  ;;  %vm768_vm11 = vcmp.ge.f32.partialorder %v1837_v52, 0.0 }
 0x113   :  { %v1844_v55 = vpop.eup %1335  ;;  %v579_v5 = vmul.f32 %v1334_v61, %v1752_v37  ;;  %1351 = vrcp.f32 %v689_v17  ;;  %v1861_v37 = vadd.f32 %v1657_v63, %v1681_v15  ;;  %v833_v17 = vmul.f32 1.442695, %v816_v24 }
 0x114   :  { %1353 = vrcp.f32 %v865_v33  ;;  %v687_v59 = vadd.f32 1.0, %v1844_v55  ;;  %vm725_vm12 = vcmp.ge.f32.partialorder %v1842_v53, 0.0 }
 0x115   :  { %v595_v38 = vsel %vm563_vm13, %v1334_v61, %v579_v5  ;;  %1355 = vpow2.f32 %v837_v54  ;;  %v1338_v3 = vpop.eup %1337  ;;  %v667_v54 = vmul.f32 1.442695, %v645_v47  ;;  %v627_v5 = vand.u32 2147483647, %v1861_v37 }
 0x116   :  { %611 = vst.msk [vmem:[#allocation3 + $0x20] sm:$0xff] %vm97_vm0, %v595_v38  ;;  %1357 = vrcp.f32 %v687_v59  ;;  %v1340_v42 = vpop.eup %1339  ;;  %v587_v13 = vmul.f32 %v1338_v3, %v1781_v9  ;;  %vm773_vm13 = vcmp.ge.f32.partialorder %v1857_v19, 0.0 }
 0x117   :  { %1359 = vpow2.f32 %v657_v58  ;;  %v1864_v25 = vpop.eup %1341  ;;  %v582_v56 = vmul.f32 %v1340_v42, %v1791_v50  ;;  %v1885_v58 = vadd.f32 %v1662_v0, %v1683_v16  ;;  %v643_v30 = vsub.f32 0.0, %v627_v5  ;;  %v989_v5 = vld [vmem:[#allocation3] sm:$0xff] }
 0x118   :  { %v1870_v14 = vpop.eup %1343  ;;  %v603_v15 = vsel %vm571_vm14, %v1338_v3, %v587_v13  ;;  %v863_v9 = vadd.f32 1.0, %v1864_v25  ;;  %vm723_vm14 = vcmp.ge.f32.partialorder %v1861_v37, 0.0 }
 0x119   :  { %619 = vst.msk [vmem:[#allocation3 + $0x60] sm:$0xff] %vm97_vm0, %v603_v15  ;;  %v598_v50 = vsel %vm566_vm15, %v1340_v42, %v582_v56  ;;  %v690_v33 = vadd.f32 1.0, %v1870_v14  ;;  %v663_v24 = vmul.f32 1.442695, %v643_v30  ;;  %v803_v15 = vand.u32 2147483647, %v1885_v58 }
 0x11a   :  { %v1346_v61 = vpop.eup %1345  ;;  %614 = vst.msk [vmem:[#allocation3 + $0x38] sm:$0xff] %vm97_vm0, %v598_v50  ;;  %1361 = vrcp.f32 %v863_v9  ;;  %vm771_vm15 = vcmp.ge.f32.partialorder %v1885_v58, 0.0 }
 0x11b   :  { %v1348_v59 = vpop.eup %1347  ;;  %v590_v26 = vmul.f32 %v1346_v61, %v1812_v60  ;;  %1363 = vrcp.f32 %v690_v33  ;;  %v819_v50 = vsub.f32 0.0, %v803_v15 }
 0x11c   :  { %v1350_v38 = vpop.eup %1349  ;;  %v580_v27 = vmul.f32 %v1348_v59, %v1819_v1  ;;  %1365 = vpow2.f32 %v833_v17 }
 0x11d   :  { %v1352_v3 = vpop.eup %1351  ;;  %v606_v42 = vsel %vm574_vm1, %v1346_v61, %v590_v26  ;;  %v588_v13 = vmul.f32 %v1350_v38, %v1823_v44  ;;  %1367 = vpow2.f32 %v667_v54  ;;  %v785_v44 = vadd.f32 0.5, %v1690_v22 }
 0x11e   :  { %v1354_v60 = vpop.eup %1353  ;;  %622 = vst.msk [vmem:[#allocation3 + $0x78] sm:$0xff] %vm97_vm0, %v606_v42  ;;  %v596_v16 = vsel %vm564_vm2, %v1348_v59, %v580_v27  ;;  %v737_v1 = vmul.f32 %v1352_v3, %v1827_v49  ;;  %1369 = vpow2.f32 %v843_v7  ;;  %v786_v59 = vadd.f32 0.5, %v1775_v4 }
 0x11f   :  { %v1896_v47 = vpop.eup %1355  ;;  %612 = vst.msk [vmem:[#allocation3 + $0x28] sm:$0xff] %vm97_vm0, %v596_v16  ;;  %v604_v31 = vsel %vm572_vm3, %v1350_v38, %v588_v13  ;;  %v897_v56 = vmul.f32 %v1354_v60, %v1832_v21  ;;  %1371 = vpow2.f32 %v663_v24  ;;  %v1915_v21 = vadd.f32 %v1692_v34, %v1657_v63  ;;  %v2281_v38 = vld [vmem:[#allocation5_spill] sm:$0xff] }
 0x120   :  { %v1358_v8 = vpop.eup %1357  ;;  %620 = vst.msk [vmem:[#allocation3 + $0x68] sm:$0xff] %vm97_vm0, %v604_v31  ;;  %v753_v48 = vsel %vm721_vm4, %v1352_v3, %v737_v1  ;;  %v866_v49 = vadd.f32 1.0, %v1896_v47  ;;  %v783_v34 = vadd.f32 0.5, %v1734_v35  ;;  %v1932_v27 = vadd.f32 %v1657_v63, %v2281_v38  ;;  %v2282_v1 = vld [vmem:[#allocation6_spill] sm:$0xff] }
 0x121   :  { %v1908_v9 = vpop.eup %1359  ;;  %v913_v11 = vsel %vm769_vm5, %v785_v44, %v897_v56  ;;  %v735_v17 = vmul.f32 %v1358_v8, %v1844_v55  ;;  %v630_v22 = vand.u32 2147483647, %v1915_v21  ;;  %v839_v55 = vmul.f32 1.442695, %v819_v50  ;;  %v990_v50 = vld [vmem:[#allocation3 + $0x8] sm:$0xff] }
 0x122   :  { %v929_v54 = vmul.f32 %v913_v11, %v753_v48  ;;  %1373 = vrcp.f32 %v866_v49  ;;  %v688_v61 = vadd.f32 1.0, %v1908_v9  ;;  %v822_v42 = vsub.f32 0.0, %v806_v20  ;;  %v2283_v11 = vld [vmem:[#allocation7_spill] sm:$0xff] }
 0x123   :  { %v646_v26 = vsub.f32 0.0, %v630_v22  ;;  %v751_v30 = vsel %vm719_vm6, %v1358_v8, %v735_v17  ;;  %v628_v16 = vand.u32 2147483647, %v1932_v27  ;;  %v1943_v24 = vadd.f32 %v1662_v0, %v2282_v1 }
 0x124   :  { %945 = vst.msk [vmem:[#allocation4 + $0x10] sm:$0xff] %vm97_vm0, %v929_v54  ;;  %1375 = vrcp.f32 %v688_v61  ;;  %v1362_v33 = vpop.eup %1361  ;;  %v1947_v31 = vadd.f32 %v1722_v6, %v1657_v63  ;;  %v1960_v6 = vadd.f32 %v2283_v11, %v1662_v0  ;;  %v988_v54 = vld [vmem:[#allocation2 + $0x8] sm:$0xff]  ;;  %v845_v61 = vmul.f32 1.442695, %v822_v42 }
 0x125   :  { %v1364_v7 = vpop.eup %1363  ;;  %v895_v3 = vmul.f32 %v1362_v33, %v1864_v25  ;;  %1377 = vpow2.f32 %v839_v55  ;;  %v669_v60 = vmul.f32 1.442695, %v646_v26  ;;  %v991_v25 = vmul.f32 %v989_v5, %v987_v2  ;;  %v2284_v11 = vld [vmem:[#allocation8_spill] sm:$0xff] }
 0x126   :  { %v1938_v13 = vpop.eup %1365  ;;  %v738_v56 = vmul.f32 %v1364_v7, %v1870_v14  ;;  %v644_v14 = vsub.f32 0.0, %v628_v16  ;;  %v633_v55 = vand.u32 2147483647, %v1947_v31  ;;  %v809_v42 = vand.u32 2147483647, %v1960_v6 }
 0x127   :  { %v1949_v28 = vpop.eup %1367  ;;  %v911_v44 = vsel %vm767_vm7, %v783_v34, %v895_v3  ;;  %v864_v8 = vadd.f32 1.0, %v1938_v13  ;;  %1379 = vpow2.f32 %v669_v60  ;;  %v804_v34 = vand.u32 2147483647, %v1943_v24 }
 0x128   :  { %v1955_v48 = vpop.eup %1369  ;;  %v927_v49 = vmul.f32 %v911_v44, %v751_v30  ;;  %v693_v15 = vadd.f32 1.0, %v1949_v28  ;;  %v754_v33 = vsel %vm722_vm8, %v1364_v7, %v738_v56  ;;  %v665_v2 = vmul.f32 1.442695, %v644_v14 }
 0x129   :  { %v1962_v17 = vpop.eup %1371  ;;  %1381 = vrcp.f32 %v864_v8  ;;  %v869_v35 = vadd.f32 1.0, %v1955_v48  ;;  %v820_v26 = vsub.f32 0.0, %v804_v34  ;;  %v649_v38 = vsub.f32 0.0, %v633_v55 }
 0x12a   :  { %943 = vst.msk [vmem:[#allocation4] sm:$0xff] %vm97_vm0, %v927_v49  ;;  %1383 = vrcp.f32 %v693_v15  ;;  %v691_v22 = vadd.f32 1.0, %v1962_v17  ;;  %v1973_v3 = vmul.f32 %v990_v50, %v988_v54  ;;  %v1978_v60 = vadd.f32 %v1657_v63, %v1727_v29  ;;  %v1000_v50 = vld [vmem:[#allocation3 + $0x10] sm:$0xff] }
 0x12b   :  { %1385 = vrcp.f32 %v869_v35  ;;  %v675_v1 = vmul.f32 1.442695, %v649_v38  ;;  %v825_v44 = vsub.f32 0.0, %v809_v42  ;;  %v784_v49 = vadd.f32 0.5, %v1837_v52 }
 0x12c   :  { %v1374_v20 = vpop.eup %1373  ;;  %1387 = vrcp.f32 %v691_v22  ;;  %v631_v56 = vand.u32 2147483647, %v1978_v60  ;;  %v1992_v54 = vadd.f32 %v1662_v0, %v2284_v11  ;;  %v789_v38 = vadd.f32 0.5, %v1857_v19 }
 0x12d   :  { %v898_v5 = vmul.f32 %v1374_v20, %v1896_v47  ;;  %1389 = vpow2.f32 %v845_v61  ;;  %v841_v47 = vmul.f32 1.442695, %v820_v26  ;;  %v2052_v11 = vadd.f32 %v1657_v63, %v1743_v36 }
 0x12e   :  { %v1376_v30 = vpop.eup %1375  ;;  %1391 = vpow2.f32 %v665_v2  ;;  %v647_v15 = vsub.f32 0.0, %v631_v56  ;;  %vm726_vm1 = vcmp.ge.f32.partialorder %v1915_v21, 0.0  ;;  %vm774_vm2 = vcmp.ge.f32.partialorder %v1919_v12, 0.0 }
 0x12f   :  { %v914_v40 = vsel %vm770_vm9, %v786_v59, %v898_v5  ;;  %v1983_v7 = vpop.eup %1377  ;;  %v736_v8 = vmul.f32 %v1376_v30, %v1908_v9  ;;  %1393 = vpow2.f32 %v841_v47  ;;  %v851_v59 = vmul.f32 1.442695, %v825_v44  ;;  %v1005_v5 = vld [vmem:[#allocation4 + $0x10] sm:$0xff] }
 0x130   :  { %v930_v16 = vmul.f32 %v914_v40, %v754_v33  ;;  %v867_v29 = vadd.f32 1.0, %v1983_v7  ;;  %1395 = vpow2.f32 %v675_v1  ;;  %v1999_v9 = vadd.f32 %v1736_v46, %v1657_v63 }
 0x131   :  { %v993_v4 = vld [vmem:[#allocation4] sm:$0xff]  ;;  %v1994_v35 = vpop.eup %1379  ;;  %v671_v34 = vmul.f32 1.442695, %v647_v15  ;;  %v752_v20 = vsel %vm720_vm10, %v1376_v30, %v736_v8  ;;  %v807_v33 = vand.u32 2147483647, %v1992_v54  ;;  %v2025_v44 = vadd.f32 %v1738_v18, %v1662_v0 }
 0x132   :  { %946 = vst.msk [vmem:[#allocation4 + $0x18] sm:$0xff] %vm97_vm0, %v930_v16  ;;  %v995_v61 = vadd.f32 %v993_v4, %v991_v25  ;;  %1397 = vrcp.f32 %v867_v29  ;;  %v694_v22 = vadd.f32 1.0, %v1994_v35  ;;  %v634_v42 = vand.u32 2147483647, %v1999_v9 }
 0x133   :  { %v1382_v14 = vpop.eup %1381  ;;  %1399 = vpow2.f32 %v851_v59  ;;  %v823_v1 = vsub.f32 0.0, %v807_v33  ;;  %v810_v37 = vand.u32 2147483647, %v2025_v44  ;;  %v2069_v33 = vadd.f32 %v1777_v51, %v1657_v63 }
 0x134   :  { %v1384_v55 = vpop.eup %1383  ;;  %997 = vst.msk [vmem:[%s2276_s4] sm:$0xff] %vm97_vm0, %v995_v61  ;;  %v1002_v25 = vmul.f32 %v1000_v50, %v995_v61  ;;  %v896_v46 = vmul.f32 %v1382_v14, %v1938_v13  ;;  %1401 = vrcp.f32 %v694_v22  ;;  %v650_v8 = vsub.f32 0.0, %v634_v42 }
 0x135   :  { %v1386_v2 = vpop.eup %1385  ;;  %v741_v26 = vmul.f32 %v1384_v55, %v1949_v28  ;;  %1403 = vpow2.f32 %v671_v34  ;;  %v847_v19 = vmul.f32 1.442695, %v823_v1  ;;  %v790_v50 = vadd.f32 0.5, %v1919_v12 }
 0x136   :  { %v1388_v40 = vpop.eup %1387  ;;  %v912_v47 = vsel %vm768_vm11, %v784_v49, %v896_v46  ;;  %v901_v41 = vmul.f32 %v1386_v2, %v1955_v48  ;;  %v2017_v30 = vadd.f32 %v1005_v5, %v1002_v25  ;;  %v677_v4 = vmul.f32 1.442695, %v650_v8 }
 0x137   :  { %v2019_v13 = vpop.eup %1389  ;;  %v928_v16 = vmul.f32 %v912_v47, %v752_v20  ;;  %v757_v28 = vsel %vm725_vm12, %v1384_v55, %v741_v26  ;;  %v739_v48 = vmul.f32 %v1388_v40, %v1962_v17  ;;  %v787_v17 = vadd.f32 0.5, %v1885_v58 }
 0x138   :  { %v2027_v56 = vpop.eup %1391  ;;  %v917_v52 = vsel %vm773_vm13, %v789_v38, %v901_v41  ;;  %1147 = vst.msk [vmem:[%s2276_s4 + $0x10] sm:$0xff] %vm97_vm0, %v2017_v30  ;;  %v870_v53 = vadd.f32 1.0, %v2019_v13  ;;  %v826_v25 = vsub.f32 0.0, %v810_v37  ;;  %v632_v20 = vand.u32 2147483647, %v2052_v11 }
 0x139   :  { %944 = vst.msk [vmem:[#allocation4 + $0x8] sm:$0xff] %vm97_vm0, %v928_v16  ;;  %v933_v18 = vmul.f32 %v917_v52, %v757_v28  ;;  %v692_v49 = vadd.f32 1.0, %v2027_v56  ;;  %v2041_v29 = vpop.eup %1393  ;;  %v755_v14 = vsel %vm723_vm14, %v1388_v40, %v739_v48  ;;  %v2065_v46 = vadd.f32 %v1662_v0, %v1745_v45  ;;  %v1001_v45 = vld [vmem:[#allocation3 + $0x18] sm:$0xff] }
 0x13a   :  { %1405 = vrcp.f32 %v870_v53  ;;  %v2045_v59 = vpop.eup %1395  ;;  %v868_v15 = vadd.f32 1.0, %v2041_v29  ;;  %v853_v5 = vmul.f32 1.442695, %v826_v25  ;;  %v648_v26 = vsub.f32 0.0, %v632_v20  ;;  %v1013_v53 = vld [vmem:[#allocation3 + $0x20] sm:$0xff]  ;;  %v1006_v8 = vld [vmem:[#allocation4 + $0x18] sm:$0xff] }
 0x13b   :  { %949 = vst.msk [vmem:[#allocation4 + $0x30] sm:$0xff] %vm97_vm0, %v933_v18  ;;  %1407 = vrcp.f32 %v692_v49  ;;  %v697_v22 = vadd.f32 1.0, %v2045_v59  ;;  %vm724_vm3 = vcmp.ge.f32.partialorder %v1932_v27, 0.0  ;;  %vm772_vm4 = vcmp.ge.f32.partialorder %v1943_v24, 0.0 }
 0x13c   :  { %v1398_v61 = vpop.eup %1397  ;;  %1409 = vpow2.f32 %v847_v19  ;;  %v673_v41 = vmul.f32 1.442695, %v648_v26  ;;  %v788_v16 = vadd.f32 0.5, %v1943_v24  ;;  %vm729_vm5 = vcmp.ge.f32.partialorder %v1947_v31, 0.0 }
 0x13d   :  { %v2057_v34 = vpop.eup %1399  ;;  %v899_v55 = vmul.f32 %v1398_v61, %v1983_v7  ;;  %1411 = vrcp.f32 %v868_v15  ;;  %v637_v28 = vand.u32 2147483647, %v2069_v33  ;;  %v2091_v1 = vadd.f32 %v1779_v10, %v1662_v0 }
 0x13e   :  { %1413 = vrcp.f32 %v697_v22  ;;  %v873_v36 = vadd.f32 1.0, %v2057_v34  ;;  %v1402_v2 = vpop.eup %1401  ;;  %v2095_v52 = vadd.f32 %v1657_v63, %v1787_v39  ;;  %vm777_vm6 = vcmp.ge.f32.partialorder %v1960_v6, 0.0 }
 0x13f   :  { %v915_v7 = vsel %vm771_vm15, %v787_v17, %v899_v55  ;;  %1415 = vpow2.f32 %v677_v4  ;;  %v2073_v38 = vpop.eup %1403  ;;  %v742_v47 = vmul.f32 %v1402_v2, %v1994_v35  ;;  %v808_v35 = vand.u32 2147483647, %v2065_v46 }
 0x140   :  { %v994_v42 = vld [vmem:[#allocation4 + $0x8] sm:$0xff]  ;;  %v931_v40 = vmul.f32 %v915_v7, %v755_v14  ;;  %1417 = vrcp.f32 %v873_v36  ;;  %v695_v58 = vadd.f32 1.0, %v2073_v38  ;;  %v793_v18 = vadd.f32 0.5, %v1960_v6 }
 0x141   :  { %v996_v51 = vadd.f32 %v994_v42, %v1973_v3  ;;  %1419 = vpow2.f32 %v853_v5  ;;  %v824_v49 = vsub.f32 0.0, %v808_v35  ;;  %v653_v19 = vsub.f32 0.0, %v637_v28 }
 0x142   :  { %947 = vst.msk [vmem:[#allocation4 + $0x20] sm:$0xff] %vm97_vm0, %v931_v40  ;;  %1421 = vrcp.f32 %v695_v58  ;;  %v1015_v4 = vmul.f32 %v1013_v53, %v2017_v30  ;;  %v758_v10 = vsel %vm726_vm1, %v1402_v2, %v742_v47  ;;  %v813_v55 = vand.u32 2147483647, %v2091_v1 }
 0x143   :  { %998 = vst.msk [vmem:[%s2276_s4 + $0x8] sm:$0xff] %vm97_vm0, %v996_v51  ;;  %v1003_v3 = vmul.f32 %v1001_v45, %v996_v51  ;;  %1423 = vpow2.f32 %v673_v41  ;;  %v849_v14 = vmul.f32 1.442695, %v824_v49  ;;  %v683_v22 = vmul.f32 1.442695, %v653_v19  ;;  %v1026_v45 = vld [vmem:[#allocation3 + $0x30] sm:$0xff] }
 0x144   :  { %v1406_v48 = vpop.eup %1405  ;;  %v635_v30 = vand.u32 2147483647, %v2095_v52  ;;  %v829_v26 = vsub.f32 0.0, %v813_v55  ;;  %vm727_vm7 = vcmp.ge.f32.partialorder %v1978_v60, 0.0  ;;  %v2158_v6 = vadd.f32 %v1798_v23, %v1657_v63 }
 0x145   :  { %v1408_v17 = vpop.eup %1407  ;;  %v902_v15 = vmul.f32 %v1406_v48, %v2019_v13  ;;  %v1008_v39 = vadd.f32 %v1006_v8, %v1003_v3  ;;  %v2117_v13 = vadd.f32 %v1662_v0, %v1789_v43  ;;  %1425 = vpow2.f32 %v849_v14  ;;  %v1031_v3 = vld [vmem:[#allocation4 + $0x30] sm:$0xff] }
 0x146   :  { %v2103_v37 = vpop.eup %1409  ;;  %v740_v61 = vmul.f32 %v1408_v17, %v2027_v56  ;;  %v651_v42 = vsub.f32 0.0, %v635_v30  ;;  %v859_v41 = vmul.f32 1.442695, %v829_v26  ;;  %v2166_v60 = vadd.f32 %v1657_v63, %v1804_v62 }
 0x147   :  { %v1412_v25 = vpop.eup %1411  ;;  %v918_v20 = vsel %vm774_vm2, %v790_v50, %v902_v15  ;;  %1148 = vst.msk [vmem:[%s2276_s4 + $0x18] sm:$0xff] %vm97_vm0, %v1008_v39  ;;  %v871_v21 = vadd.f32 1.0, %v2103_v37  ;;  %v811_v19 = vand.u32 2147483647, %v2117_v13  ;;  %vm775_vm8 = vcmp.ge.f32.partialorder %v1992_v54, 0.0 }
 0x148   :  { %v1414_v56 = vpop.eup %1413  ;;  %v934_v36 = vmul.f32 %v918_v20, %v758_v10  ;;  %v756_v2 = vsel %vm724_vm3, %v1408_v17, %v740_v61  ;;  %v900_v12 = vmul.f32 %v1412_v25, %v2041_v29  ;;  %v679_v35 = vmul.f32 1.442695, %v651_v42  ;;  %v1014_v17 = vld [vmem:[#allocation3 + $0x28] sm:$0xff]  ;;  %v1469_v20 = vld [vmem:[%s2275_s3 + $0x2] ss:$0 sm:$0xff] }
 0x149   :  { %v2122_v50 = vpop.eup %1415  ;;  %v1018_v7 = vld [vmem:[#allocation4 + $0x20] sm:$0xff]  ;;  %v745_v5 = vmul.f32 %v1414_v56, %v2045_v59  ;;  %1427 = vrcp.f32 %v871_v21  ;;  %v791_v15 = vadd.f32 0.5, %v1992_v54  ;;  %vm730_vm9 = vcmp.ge.f32.partialorder %v1999_v9, 0.0 }
 0x14a   :  { %v1418_v40 = vpop.eup %1417  ;;  %v1020_v47 = vadd.f32 %v1018_v7, %v1015_v4  ;;  %950 = vst.msk [vmem:[#allocation4 + $0x38] sm:$0xff] %vm97_vm0, %v934_v36  ;;  %v916_v43 = vsel %vm772_vm4, %v788_v16, %v900_v12  ;;  %v698_v27 = vadd.f32 1.0, %v2122_v50  ;;  %1429 = vpow2.f32 %v683_v22  ;;  %v1027_v12 = vld [vmem:[#allocation3 + $0x38] sm:$0xff]  ;;  %v1039_v9 = vld [vmem:[#allocation3 + $0x40] sm:$0xff] }
 0x14b   :  { %v2129_v29 = vpop.eup %1419  ;;  %v932_v51 = vmul.f32 %v916_v43, %v756_v2  ;;  %v761_v59 = vsel %vm729_vm5, %v1414_v56, %v745_v5  ;;  %v905_v58 = vmul.f32 %v1418_v40, %v2057_v34  ;;  %v827_v4 = vsub.f32 0.0, %v811_v19 }
 0x14c   :  { %1149 = vst.msk [vmem:[%s2276_s4 + $0x20] sm:$0xff] %vm97_vm0, %v1020_v47  ;;  %v1028_v24 = vmul.f32 %v1026_v45, %v1020_v47  ;;  %1431 = vrcp.f32 %v698_v27  ;;  %v874_v16 = vadd.f32 1.0, %v2129_v29  ;;  %v1422_v28 = vpop.eup %1421  ;;  %v638_v23 = vand.u32 2147483647, %v2158_v6 }
 0x14d   :  { %948 = vst.msk [vmem:[#allocation4 + $0x28] sm:$0xff] %vm97_vm0, %v932_v51  ;;  %v921_v31 = vsel %vm777_vm6, %v793_v18, %v905_v58  ;;  %1433 = vpow2.f32 %v859_v41  ;;  %v2142_v34 = vpop.eup %1423  ;;  %v743_v8 = vmul.f32 %v1422_v28, %v2073_v38  ;;  %v2162_v38 = vadd.f32 %v1800_v32, %v1662_v0 }
 0x14e   :  { %v937_v48 = vmul.f32 %v921_v31, %v761_v59  ;;  %v2144_v53 = vadd.f32 %v1031_v3, %v1028_v24  ;;  %1435 = vrcp.f32 %v874_v16  ;;  %v696_v49 = vadd.f32 1.0, %v2142_v34 }
 0x14f   :  { %1437 = vpow2.f32 %v679_v35  ;;  %v1016_v18 = vmul.f32 %v1014_v17, %v1008_v39  ;;  %v2168_v10 = vpop.eup %1425  ;;  %v759_v0 = vsel %vm727_vm7, %v1422_v28, %v743_v8  ;;  %v855_v39 = vmul.f32 1.442695, %v827_v4 }
 0x150   :  { %953 = vst.msk [vmem:[#allocation4 + $0x50] sm:$0xff] %vm97_vm0, %v937_v48  ;;  %1151 = vst.msk [vmem:[%s2276_s4 + $0x30] sm:$0xff] %vm97_vm0, %v2144_v53  ;;  %1439 = vrcp.f32 %v696_v49  ;;  %v872_v32 = vadd.f32 1.0, %v2168_v10  ;;  %v814_v14 = vand.u32 2147483647, %v2162_v38  ;;  %v654_v55 = vsub.f32 0.0, %v638_v23 }
 0x151   :  { %v636_v25 = vand.u32 2147483647, %v2166_v60  ;;  %v2184_v21 = vadd.f32 %v1469_v20, %v1806_v57  ;;  %v1032_v43 = vld [vmem:[#allocation4 + $0x38] sm:$0xff]  ;;  %v794_v54 = vadd.f32 0.5, %v2025_v44  ;;  %vm778_vm10 = vcmp.ge.f32.partialorder %v2025_v44, 0.0 }
 0x152   :  { %1441 = vrcp.f32 %v872_v32  ;;  %v830_v36 = vsub.f32 0.0, %v814_v14  ;;  %v685_v7 = vmul.f32 1.442695, %v654_v55  ;;  %v1041_v44 = vmul.f32 %v1039_v9, %v2144_v53 }
 0x153   :  { %v1428_v61 = vpop.eup %1427  ;;  %1443 = vpow2.f32 %v855_v39  ;;  %v652_v5 = vsub.f32 0.0, %v636_v25  ;;  %v812_v16 = vand.u32 2147483647, %v2184_v21  ;;  %vm728_vm11 = vcmp.ge.f32.partialorder %v2052_v11, 0.0 }
 0x154   :  { %v2176_v22 = vpop.eup %1429  ;;  %v1019_v63 = vld [vmem:[#allocation4 + $0x28] sm:$0xff]  ;;  %v903_v62 = vmul.f32 %v1428_v61, %v2103_v37  ;;  %v861_v45 = vmul.f32 1.442695, %v830_v36  ;;  %vm776_vm12 = vcmp.ge.f32.partialorder %v2065_v46, 0.0  ;;  %v1052_v61 = vld [vmem:[#allocation3 + $0x50] sm:$0xff]  ;;  %vm733_vm13 = vcmp.ge.f32.partialorder %v2069_v33, 0.0 }
 0x155   :  { %v1021_v30 = vadd.f32 %v1019_v63, %v1016_v18  ;;  %v701_v56 = vadd.f32 1.0, %v2176_v22  ;;  %v828_v31 = vsub.f32 0.0, %v812_v16  ;;  %v792_v18 = vadd.f32 0.5, %v2065_v46  ;;  %v1040_v33 = vld [vmem:[#allocation3 + $0x48] sm:$0xff] }
 0x156   :  { %v1432_v2 = vpop.eup %1431  ;;  %v919_v37 = vsel %vm775_vm8, %v791_v15, %v903_v62  ;;  %v797_v46 = vadd.f32 0.5, %v2091_v1  ;;  %vm781_vm14 = vcmp.ge.f32.partialorder %v2091_v1, 0.0  ;;  %vm731_vm15 = vcmp.ge.f32.partialorder %v2095_v52, 0.0 }
 0x157   :  { %v2189_v26 = vpop.eup %1433  ;;  %1150 = vst.msk [vmem:[%s2276_s4 + $0x28] sm:$0xff] %vm97_vm0, %v1021_v30  ;;  %v1029_v57 = vmul.f32 %v1027_v12, %v1021_v30  ;;  %v935_v42 = vmul.f32 %v919_v37, %v759_v0  ;;  %v746_v40 = vmul.f32 %v1432_v2, %v2122_v50  ;;  %1445 = vrcp.f32 %v701_v56  ;;  %v1057_v63 = vld [vmem:[#allocation4 + $0x50] sm:$0xff] }
 0x158   :  { %v1436_v47 = vpop.eup %1435  ;;  %v877_v27 = vadd.f32 1.0, %v2189_v26  ;;  %1447 = vpow2.f32 %v685_v7  ;;  %v681_v50 = vmul.f32 1.442695, %v652_v5  ;;  %v857_v48 = vmul.f32 1.442695, %v828_v31 }
 0x159   :  { %v2198_v51 = vpop.eup %1437  ;;  %951 = vst.msk [vmem:[#allocation4 + $0x40] sm:$0xff] %vm97_vm0, %v935_v42  ;;  %v762_v59 = vsel %vm730_vm9, %v1432_v2, %v746_v40  ;;  %v906_v58 = vmul.f32 %v1436_v47, %v2129_v29  ;;  %v1034_v41 = vadd.f32 %v1032_v43, %v1029_v57  ;;  %v1053_v40 = vld [vmem:[#allocation3 + $0x58] sm:$0xff]  ;;  %v795_v43 = vadd.f32 0.5, %v2117_v13 }
 0x15a   :  { %1449 = vrcp.f32 %v877_v27  ;;  %v699_v24 = vadd.f32 1.0, %v2198_v51  ;;  %v1440_v35 = vpop.eup %1439  ;;  %vm779_vm1 = vcmp.ge.f32.partialorder %v2117_v13, 0.0  ;;  %vm734_vm2 = vcmp.ge.f32.partialorder %v2158_v6, 0.0 }
 0x15b   :  { %v922_v28 = vsel %vm778_vm10, %v794_v54, %v906_v58  ;;  %1152 = vst.msk [vmem:[%s2276_s4 + $0x38] sm:$0xff] %vm97_vm0, %v1034_v41  ;;  %1451 = vpow2.f32 %v861_v45  ;;  %v744_v29 = vmul.f32 %v1440_v35, %v2142_v34  ;;  %v1042_v37 = vmul.f32 %v1040_v33, %v1034_v41 }
 0x15c   :  { %v938_v3 = vmul.f32 %v922_v28, %v762_v59  ;;  %1453 = vrcp.f32 %v699_v24  ;;  %v1442_v8 = vpop.eup %1441  ;;  %v798_v16 = vadd.f32 0.5, %v2162_v38  ;;  %vm782_vm3 = vcmp.ge.f32.partialorder %v2162_v38, 0.0 }
 0x15d   :  { %1455 = vpow2.f32 %v681_v50  ;;  %v1444_v49 = vpop.eup %1443  ;;  %v760_v17 = vsel %vm728_vm11, %v1440_v35, %v744_v29  ;;  %v904_v4 = vmul.f32 %v1442_v8, %v2168_v10  ;;  %vm732_vm4 = vcmp.ge.f32.partialorder %v2166_v60, 0.0 }
 0x15e   :  { %954 = vst.msk [vmem:[#allocation4 + $0x58] sm:$0xff] %vm97_vm0, %v938_v3  ;;  %1457 = vpow2.f32 %v857_v48  ;;  %v875_v53 = vadd.f32 1.0, %v1444_v49  ;;  %v1065_v3 = vld [vmem:[#allocation3 + $0x60] sm:$0xff]  ;;  %v796_v48 = vadd.f32 0.5, %v2184_v21  ;;  %vm780_vm5 = vcmp.ge.f32.partialorder %v2184_v21, 0.0 }
 0x15f   :  { %v920_v0 = vsel %vm776_vm12, %v792_v18, %v904_v4  ;;  %v1078_v18 = vld [vmem:[#allocation3 + $0x70] sm:$0xff] }
 0x160   :  { %v1044_v19 = vld [vmem:[#allocation4 + $0x40] sm:$0xff]  ;;  %v936_v39 = vmul.f32 %v920_v0, %v760_v17  ;;  %1459 = vrcp.f32 %v875_v53 }
 0x161   :  { %v1446_v34 = vpop.eup %1445  ;;  %v1046_v15 = vadd.f32 %v1044_v19, %v1041_v44 }
 0x162   :  { %v1448_v23 = vpop.eup %1447  ;;  %v749_v32 = vmul.f32 %v1446_v34, %v2176_v22  ;;  %952 = vst.msk [vmem:[#allocation4 + $0x48] sm:$0xff] %vm97_vm0, %v936_v39 }
 0x163   :  { %1153 = vst.msk [vmem:[%s2276_s4 + $0x40] sm:$0xff] %vm97_vm0, %v1046_v15  ;;  %v1054_v11 = vmul.f32 %v1052_v61, %v1046_v15  ;;  %v702_v10 = vadd.f32 1.0, %v1448_v23  ;;  %v1066_v15 = vld [vmem:[#allocation3 + $0x68] sm:$0xff]  ;;  %v1079_v61 = vld [vmem:[#allocation3 + $0x78] sm:$0xff] }
 0x164   :  { %v1450_v14 = vpop.eup %1449  ;;  %v765_v55 = vsel %vm733_vm13, %v1446_v34, %v749_v32 }
 0x165   :  { %v1452_v62 = vpop.eup %1451  ;;  %v909_v22 = vmul.f32 %v1450_v14, %v2189_v26  ;;  %v1059_v25 = vadd.f32 %v1057_v63, %v1054_v11  ;;  %1461 = vrcp.f32 %v702_v10 }
 0x166   :  { %v1454_v20 = vpop.eup %1453  ;;  %v878_v30 = vadd.f32 1.0, %v1452_v62 }
 0x167   :  { %v1456_v56 = vpop.eup %1455  ;;  %v925_v36 = vsel %vm781_vm14, %v797_v46, %v909_v22  ;;  %1155 = vst.msk [vmem:[%s2276_s4 + $0x50] sm:$0xff] %vm97_vm0, %v1059_v25  ;;  %v747_v5 = vmul.f32 %v1454_v20, %v2198_v51  ;;  %v1058_v51 = vld [vmem:[#allocation4 + $0x58] sm:$0xff]  ;;  %v1067_v6 = vmul.f32 %v1065_v3, %v1059_v25 }
 0x168   :  { %v941_v2 = vmul.f32 %v925_v36, %v765_v55  ;;  %1463 = vrcp.f32 %v878_v30  ;;  %v700_v12 = vadd.f32 1.0, %v1456_v56  ;;  %v1458_v7 = vpop.eup %1457 }
 0x169   :  { %v876_v1 = vadd.f32 1.0, %v1458_v7  ;;  %v1045_v26 = vld [vmem:[#allocation4 + $0x48] sm:$0xff]  ;;  %v763_v47 = vsel %vm731_vm15, %v1454_v20, %v747_v5 }
 0x16a   :  { %957 = vst.msk [vmem:[#allocation4 + $0x70] sm:$0xff] %vm97_vm0, %v941_v2  ;;  %1465 = vrcp.f32 %v700_v12  ;;  %v1460_v57 = vpop.eup %1459  ;;  %v1047_v42 = vadd.f32 %v1045_v26, %v1042_v37 }
 0x16b   :  { %1467 = vrcp.f32 %v876_v1  ;;  %v907_v54 = vmul.f32 %v1460_v57, %v1444_v49 }
 0x16c   :  { %1154 = vst.msk [vmem:[%s2276_s4 + $0x48] sm:$0xff] %vm97_vm0, %v1047_v42  ;;  %v1055_v45 = vmul.f32 %v1053_v40, %v1047_v42 }
 0x16d   :  { %v923_v59 = vsel %vm779_vm1, %v795_v43, %v907_v54 }
 0x16e   :  { %v939_v41 = vmul.f32 %v923_v59, %v763_v47  ;;  %v1060_v52 = vadd.f32 %v1058_v51, %v1055_v45 }
 0x16f   :  { %v1462_v27 = vpop.eup %1461 }
 0x170   :  { %v750_v58 = vmul.f32 %v1462_v27, %v1448_v23  ;;  %955 = vst.msk [vmem:[#allocation4 + $0x60] sm:$0xff] %vm97_vm0, %v939_v41  ;;  %1156 = vst.msk [vmem:[%s2276_s4 + $0x58] sm:$0xff] %vm97_vm0, %v1060_v52  ;;  %v1068_v21 = vmul.f32 %v1066_v15, %v1060_v52 }
 0x171   :  { %v1083_v60 = vld [vmem:[#allocation4 + $0x70] sm:$0xff] }
 0x172   :  { %v1464_v50 = vpop.eup %1463  ;;  %v766_v24 = vsel %vm734_vm2, %v1462_v27, %v750_v58 }
 0x173   :  { %v910_v35 = vmul.f32 %v1464_v50, %v1452_v62 }
 0x174   :  { %v1466_v13 = vpop.eup %1465 }
 0x175   :  { %v926_v28 = vsel %vm782_vm3, %v798_v16, %v910_v35  ;;  %v748_v9 = vmul.f32 %v1466_v13, %v1456_v56  ;;  %v1468_v31 = vpop.eup %1467 }
 0x176   :  { %v942_v29 = vmul.f32 %v926_v28, %v766_v24  ;;  %v908_v8 = vmul.f32 %v1468_v31, %v1458_v7 }
 0x177   :  { %v764_v44 = vsel %vm732_vm4, %v1466_v13, %v748_v9  ;;  %v1070_v49 = vld [vmem:[#allocation4 + $0x60] sm:$0xff] }
 0x178   :  { %958 = vst.msk [vmem:[#allocation4 + $0x78] sm:$0xff] %vm97_vm0, %v942_v29  ;;  %v924_v19 = vsel %vm780_vm5, %v796_v48, %v908_v8  ;;  %v1072_v17 = vadd.f32 %v1070_v49, %v1067_v6 }
 0x179   :  { %v940_v38 = vmul.f32 %v924_v19, %v764_v44 }
 0x17a   :  { %1157 = vst.msk [vmem:[%s2276_s4 + $0x60] sm:$0xff] %vm97_vm0, %v1072_v17  ;;  %v1080_v4 = vmul.f32 %v1078_v18, %v1072_v17 }
 0x17b   :  { %956 = vst.msk [vmem:[#allocation4 + $0x68] sm:$0xff] %vm97_vm0, %v940_v38 }
 0x17c   :  { %v1085_v34 = vadd.f32 %v1083_v60, %v1080_v4 }
 0x17e   :  { %1159 = vst.msk [vmem:[%s2276_s4 + $0x70] sm:$0xff] %vm97_vm0, %v1085_v34  ;;  %1090 = vst.msk [vmem:[#allocation2] sm:$0xff] %vm97_vm0, %v1085_v34 }
 0x17f   :  { %v1084_v32 = vld [vmem:[#allocation4 + $0x78] sm:$0xff] }
 0x182   :  { %v1071_v53 = vld [vmem:[#allocation4 + $0x68] sm:$0xff] }
 0x183   :  { %v1073_v23 = vadd.f32 %v1071_v53, %v1068_v21 }
 0x185   :  { %1158 = vst.msk [vmem:[%s2276_s4 + $0x68] sm:$0xff] %vm97_vm0, %v1073_v23  ;;  %v1081_v0 = vmul.f32 %v1079_v61, %v1073_v23 }
 0x187   :  { %v1086_v11 = vadd.f32 %v1084_v32, %v1081_v0 }
 0x189   :  { %1160 = vst.msk [vmem:[%s2276_s4 + $0x78] sm:$0xff] %vm97_vm0, %v1086_v11  ;;  %1091 = vst.msk [vmem:[#allocation2 + $0x8] sm:$0xff] %vm97_vm0, %v1086_v11 }

</bundles_post_ra>
